<compile_context>
chip_gen: v5e
topology: v5e:2x2
jax: 0.10.0
libtpu: 0.0.40
codegen_flags: <defaults>
</compile_context>

<pallas_src>
import functools

import jax
import jax.numpy as jnp
from jax.experimental import pallas as pl
from jax.experimental.pallas import tpu as pltpu


def _patch_expand_kernel(x_ref, w_ref, ind_ref, bc_ref, g_ref, b_ref, o_ref,
                         *, eps, nh, w_size, d, collapse):
    """x_ref:   (tm, d)      input tokens, tm = nh * w_size
       w_ref:   (d, 2d)      expand weight (bf16 for the MXU)
       ind_ref: (2d, 8)      chunk indicator / c  (thin stats matmul; 4 real
                             chunks + 4 zero-padded columns)
       bc_ref:  (8, 2d)      chunk broadcast-back (transpose of indicator)
       g_ref:   (1, 2d)      gamma tiled 4x
       b_ref:   (1, 2d)      beta  tiled 4x
       o_ref:   (nh, 2, W*d) if collapse else (nh, 2, W, d)
    """
    # Expand on the MXU: bf16 operands, f32 accumulation.
    xm = x_ref[...].astype(w_ref.dtype)
    y = jnp.dot(xm, w_ref[...], preferred_element_type=jnp.float32)   # (tm, 2d)

    # Per-chunk LayerNorm moments via thin indicator matmuls (f32, negligible
    # FLOPs), then var = E[y^2] - mean^2, all in f32.
    mean4 = jnp.dot(y, ind_ref[...], preferred_element_type=jnp.float32)    # (tm, 8)
    ex2 = jnp.dot(y * y, ind_ref[...], preferred_element_type=jnp.float32)  # (tm, 8)
    var4 = ex2 - mean4 * mean4
    rstd4 = jax.lax.rsqrt(var4 + eps)

    # Broadcast the per-chunk scale/shift back to the lane-dense (tm, 2d)
    # layout with tiny (8, 2d) matmuls; padded chunks contribute zero.
    scale = jnp.dot(rstd4, bc_ref[...], preferred_element_type=jnp.float32)
    shift = jnp.dot(mean4 * rstd4, bc_ref[...],
                    preferred_element_type=jnp.float32)
    yn = (y * scale - shift) * g_ref[...] + b_ref[...]
    yn = yn.astype(o_ref.dtype)

    # Spatial rearrange: channel half p1 of token (row, w) becomes output
    # super-row 2*row + p1; within a super-row the order is (w, p2, c).
    y3 = yn.reshape(nh, w_size, 2 * d)
    if collapse:
        # Lane-dense stores: trailing dim W*d is a multiple of 128.
        o_ref[:, 0, :] = y3[:, :, :d].reshape(nh, w_size * d)
        o_ref[:, 1, :] = y3[:, :, d:].reshape(nh, w_size * d)
    else:
        # d % 128 == 0: these stores are already lane-dense and the channel
        # split is vreg-aligned, so no relayout is needed.
        o_ref[:, 0, :, :] = y3[:, :, :d]
        o_ref[:, 1, :, :] = y3[:, :, d:]


def _pick_row_tile(bh, w, target_rows, sub_mult, min_steps=4):
    """nh = number of (b, h) image rows per grid step (tm = nh * w tokens)."""
    cands = [nh for nh in range(1, bh + 1)
             if bh % nh == 0 and ((nh * w) % sub_mult == 0 or nh == bh)]
    # Prefer tiles that keep >= min_steps grid steps (megacore sharding on
    # v7x, prologue/epilogue DMA hiding everywhere), then fit the row target.
    for steps in (min_steps, 2, 1):
        ok = [nh for nh in cands if bh // nh >= steps]
        if not ok:
            continue
        small = [nh for nh in ok if nh * w <= target_rows]
        return max(small) if small else min(ok)
    return bh


def patch_expand(x, w, gamma, beta, input_resolution, *, eps=1e-5,
                 target_rows=None, mxu_dtype=jnp.bfloat16, out_dtype=None):
    """x: (B, H*W, dim); w: (dim, 2*dim); gamma/beta: (dim//2,).
    Returns (B, 4*H*W, dim//2), identical to PatchExpand.forward."""
    H, W = input_resolution
    B, L, d = x.shape
    assert L == H * W, "input feature has wrong size"
    assert w.shape == (d, 2 * d)
    c = d // 2                       # LayerNorm feature dim
    bh = B * H
    out_dtype = x.dtype if out_dtype is None else out_dtype

    # Per-generation sizing from the detected VMEM capacity.
    try:
        vmem_cap = int(pltpu.get_tpu_info().vmem_capacity_bytes)
    except Exception:                # be conservative (v7x-like) if unknown
        vmem_cap = 64 * 1024 * 1024
    if target_rows is None:
        target_rows = 512 if vmem_cap >= 96 * 1024 * 1024 else 256
    vmem_limit = max(32 * 1024 * 1024,
                     min(int(0.85 * vmem_cap), 100 * 1024 * 1024))

    # bf16 inputs pack 16 rows per sublane tile; f32 packs 8.
    sub_mult = 8 if x.dtype.itemsize >= 4 else 16
    nh = _pick_row_tile(bh, W, target_rows, sub_mult)
    tm = nh * W                      # tokens per grid step

    x2 = x.reshape(B * L, d)
    w_mx = w.astype(mxu_dtype)

    # Thin chunk-indicator operands for the per-chunk LayerNorm stats
    # (padded from 4 to 8 columns for clean sublane alignment).
    chunk_id = jnp.arange(2 * d, dtype=jnp.int32) // c
    onehot = (chunk_id[:, None] == jnp.arange(8, dtype=jnp.int32)[None, :])
    ind = onehot.astype(jnp.float32) / float(c)     # (2d, 8): y @ ind = chunk means
    bc = onehot.T.astype(jnp.float32)               # (8, 2d): broadcast back

    # gamma/beta pre-tiled to the pre-rearrange (.., 2d) channel layout.
    g2 = jnp.tile(gamma.astype(jnp.float32), 4).reshape(1, 2 * d)
    b2 = jnp.tile(beta.astype(jnp.float32), 4).reshape(1, 2 * d)

    in_specs = [
        pl.BlockSpec((tm, d), lambda i: (i, 0)),          # x row tile
        pl.BlockSpec((d, 2 * d), lambda i: (0, 0)),       # weight (resident)
        pl.BlockSpec((2 * d, 8), lambda i: (0, 0)),       # chunk-mean indicator
        pl.BlockSpec((8, 2 * d), lambda i: (0, 0)),       # broadcast-back
        pl.BlockSpec((1, 2 * d), lambda i: (0, 0)),       # gamma
        pl.BlockSpec((1, 2 * d), lambda i: (0, 0)),       # beta
    ]
    cparams = pltpu.CompilerParams(dimension_semantics=("parallel",),
                                   vmem_limit_bytes=vmem_limit)

    def run(collapse):
        if collapse:
            out_shape = jax.ShapeDtypeStruct((bh, 2, W * d), out_dtype)
            out_spec = pl.BlockSpec((nh, 2, W * d), lambda i: (i, 0, 0))
        else:
            out_shape = jax.ShapeDtypeStruct((bh, 2, W, d), out_dtype)
            out_spec = pl.BlockSpec((nh, 2, W, d), lambda i: (i, 0, 0, 0))
        out4 = pl.pallas_call(
            functools.partial(_patch_expand_kernel, eps=eps, nh=nh, w_size=W,
                              d=d, collapse=collapse),
            out_shape=out_shape,
            grid_spec=pltpu.PrefetchScalarGridSpec(
                num_scalar_prefetch=0,
                grid=(bh // nh,),
                in_specs=in_specs,
                out_specs=out_spec,
            ),
            compiler_params=cparams,
        )(x2, w_mx, ind, bc, g2, b2)
        out4 = jax.block_until_ready(out4)
        # (B*H, p1, (W p2 c)) -> (B, (H p1)(W p2), c): free row-major reshape.
        return out4.reshape(B, 4 * H * W, c)

    # Lane-dense collapsed output for d % 128 != 0 (e.g. dim = 64/96/192);
    # fall back to the proven 4-D layout if this Mosaic build cannot lower
    # the sublane->lane merge relayout.
    if (d % 128 != 0) and ((W * d) % 128 == 0):
        try:
            return run(True)
        except Exception:
            pass
    return run(False)


def _reference(x, w, gamma, beta, input_resolution, eps=1e-5):
    """Pure-JAX reference mirroring the PyTorch forward (f32 throughout)."""
    H, W = input_resolution
    B, L, d = x.shape
    y = x @ w                                    # (B, L, 2d)
    c = (2 * d) // 4
    y = y.reshape(B, H, W, 2, 2, c)
    y = jnp.transpose(y, (0, 1, 3, 2, 4, 5)).reshape(B, 4 * H * W, c)
    mean = jnp.mean(y, axis=-1, keepdims=True)
    var = jnp.mean((y - mean) ** 2, axis=-1, keepdims=True)
    return (y - mean) * jax.lax.rsqrt(var + eps) * gamma + beta


if __name__ == "__main__":
    # Module config: input_resolution=(8, 8), dim=64, dim_scale=2.
    B, H, W, dim = 2, 8, 8, 64

    key = jax.random.PRNGKey(0)
    kx, kw, kg, kb = jax.random.split(key, 4)

    x = jax.random.normal(kx, (B, H * W, dim), dtype=jnp.float32)
    # nn.Linear(dim, 2*dim, bias=False): applied as x @ W with W (dim, 2*dim).
    w = jax.random.normal(kw, (dim, 2 * dim), dtype=jnp.float32) * (dim ** -0.5)
    gamma = 1.0 + 0.1 * jax.random.normal(kg, (dim // 2,), dtype=jnp.float32)
    beta = 0.1 * jax.random.normal(kb, (dim // 2,), dtype=jnp.float32)

    out = patch_expand(x, w, gamma, beta, (H, W))
    out = jax.block_until_ready(out)

    ref = _reference(x, w, gamma, beta, (H, W))
    assert out.shape == (B, 4 * H * W, dim // 2)
    err = float(jnp.max(jnp.abs(out - ref)))
    # bf16 MXU operands (per perf review) -> tolerance looser than pure f32.
    assert jnp.allclose(out, ref, atol=2e-2, rtol=2e-2), err

    print("KERNEL_OK")
</pallas_src>

<mosaic_0001>
module attributes {stable_mosaic.version = 11 : i64} {
  func.func @_patch_expand_kernel(%arg0: i32, %arg1: memref<32x64xf32, #tpu.memory_space<vmem>>, %arg2: memref<64x128xbf16, #tpu.memory_space<vmem>>, %arg3: memref<128x8xf32, #tpu.memory_space<vmem>>, %arg4: memref<8x128xf32, #tpu.memory_space<vmem>>, %arg5: memref<1x128xf32, #tpu.memory_space<vmem>>, %arg6: memref<1x128xf32, #tpu.memory_space<vmem>>, %arg7: memref<4x2x512xf32, #tpu.memory_space<vmem>>) attributes {dimension_semantics = [#tpu.dimension_semantics<parallel>], iteration_bounds = array<i64: 4>, scalar_prefetch = 0 : i64, scratch_operands = 0 : i64, tpu.core_type = #tpu.core_type<tc>, window_params = [{transform_indices = @transform_0, window_bounds = array<i64: 32, 64>}, {pipeline_mode = #tpu.pipeline_mode<synchronous>, transform_indices = @transform_1, window_bounds = array<i64: 64, 128>}, {pipeline_mode = #tpu.pipeline_mode<synchronous>, transform_indices = @transform_2, window_bounds = array<i64: 128, 8>}, {pipeline_mode = #tpu.pipeline_mode<synchronous>, transform_indices = @transform_3, window_bounds = array<i64: 8, 128>}, {pipeline_mode = #tpu.pipeline_mode<synchronous>, transform_indices = @transform_4, window_bounds = array<i64: 1, 128>}, {pipeline_mode = #tpu.pipeline_mode<synchronous>, transform_indices = @transform_5, window_bounds = array<i64: 1, 128>}, {transform_indices = @transform_6, window_bounds = array<i64: 4, 2, 512>}]} {
    %c0 = arith.constant 0 : index
    %c0_0 = arith.constant 0 : index
    %0 = vector.load %arg1[%c0, %c0_0] : memref<32x64xf32, #tpu.memory_space<vmem>>, vector<32x64xf32>
    %1 = arith.truncf %0 : vector<32x64xf32> to vector<32x64xbf16>
    %c0_1 = arith.constant 0 : index
    %c0_2 = arith.constant 0 : index
    %2 = vector.load %arg2[%c0_1, %c0_2] : memref<64x128xbf16, #tpu.memory_space<vmem>>, vector<64x128xbf16>
    %cst = arith.constant dense<0.000000e+00> : vector<32x128xf32>
    %3 = tpu.matmul %1, %2, %cst {dimension_numbers = #tpu.dot_dimension_numbers<[1], [0], [0], [1], [0, 0, 1, 1], [], []>} : vector<32x64xbf16>, vector<64x128xbf16>, vector<32x128xf32> -> vector<32x128xf32>
    %c0_3 = arith.constant 0 : index
    %c0_4 = arith.constant 0 : index
    %4 = vector.load %arg3[%c0_3, %c0_4] : memref<128x8xf32, #tpu.memory_space<vmem>>, vector<128x8xf32>
    %cst_5 = arith.constant dense<0.000000e+00> : vector<32x8xf32>
    %5 = tpu.matmul %3, %4, %cst_5 {dimension_numbers = #tpu.dot_dimension_numbers<[1], [0], [0], [1], [0, 0, 1, 1], [], []>} : vector<32x128xf32>, vector<128x8xf32>, vector<32x8xf32> -> vector<32x8xf32>
    %6 = arith.mulf %3, %3 : vector<32x128xf32>
    %c0_6 = arith.constant 0 : index
    %c0_7 = arith.constant 0 : index
    %7 = vector.load %arg3[%c0_6, %c0_7] : memref<128x8xf32, #tpu.memory_space<vmem>>, vector<128x8xf32>
    %cst_8 = arith.constant dense<0.000000e+00> : vector<32x8xf32>
    %8 = tpu.matmul %6, %7, %cst_8 {dimension_numbers = #tpu.dot_dimension_numbers<[1], [0], [0], [1], [0, 0, 1, 1], [], []>} : vector<32x128xf32>, vector<128x8xf32>, vector<32x8xf32> -> vector<32x8xf32>
    %9 = arith.mulf %5, %5 : vector<32x8xf32>
    %10 = arith.subf %8, %9 : vector<32x8xf32>
    %cst_9 = arith.constant 9.99999974E-6 : f32
    %11 = vector.broadcast %cst_9 : f32 to vector<32x8xf32>
    %12 = arith.addf %10, %11 : vector<32x8xf32>
    %13 = math.rsqrt %12 : vector<32x8xf32>
    %c0_10 = arith.constant 0 : index
    %c0_11 = arith.constant 0 : index
    %14 = vector.load %arg4[%c0_10, %c0_11] : memref<8x128xf32, #tpu.memory_space<vmem>>, vector<8x128xf32>
    %cst_12 = arith.constant dense<0.000000e+00> : vector<32x128xf32>
    %15 = tpu.matmul %13, %14, %cst_12 {dimension_numbers = #tpu.dot_dimension_numbers<[1], [0], [0], [1], [0, 0, 1, 1], [], []>} : vector<32x8xf32>, vector<8x128xf32>, vector<32x128xf32> -> vector<32x128xf32>
    %16 = arith.mulf %5, %13 : vector<32x8xf32>
    %c0_13 = arith.constant 0 : index
    %c0_14 = arith.constant 0 : index
    %17 = vector.load %arg4[%c0_13, %c0_14] : memref<8x128xf32, #tpu.memory_space<vmem>>, vector<8x128xf32>
    %cst_15 = arith.constant dense<0.000000e+00> : vector<32x128xf32>
    %18 = tpu.matmul %16, %17, %cst_15 {dimension_numbers = #tpu.dot_dimension_numbers<[1], [0], [0], [1], [0, 0, 1, 1], [], []>} : vector<32x8xf32>, vector<8x128xf32>, vector<32x128xf32> -> vector<32x128xf32>
    %19 = arith.mulf %3, %15 : vector<32x128xf32>
    %20 = arith.subf %19, %18 : vector<32x128xf32>
    %c0_16 = arith.constant 0 : index
    %c0_17 = arith.constant 0 : index
    %21 = vector.load %arg5[%c0_16, %c0_17] : memref<1x128xf32, #tpu.memory_space<vmem>>, vector<1x128xf32>
    %22 = vector.broadcast %21 : vector<1x128xf32> to vector<32x128xf32>
    %23 = arith.mulf %20, %22 : vector<32x128xf32>
    %c0_18 = arith.constant 0 : index
    %c0_19 = arith.constant 0 : index
    %24 = vector.load %arg6[%c0_18, %c0_19] : memref<1x128xf32, #tpu.memory_space<vmem>>, vector<1x128xf32>
    %25 = vector.broadcast %24 : vector<1x128xf32> to vector<32x128xf32>
    %26 = arith.addf %23, %25 : vector<32x128xf32>
    %27 = vector.shape_cast %26 : vector<32x128xf32> to vector<4x8x128xf32>
    %28 = vector.extract_strided_slice %27 {offsets = [0, 0, 0], sizes = [4, 8, 64], strides = [1, 1, 1]} : vector<4x8x128xf32> to vector<4x8x64xf32>
    %29 = vector.shape_cast %28 : vector<4x8x64xf32> to vector<4x512xf32>
    %c0_20 = arith.constant 0 : index
    %c0_21 = arith.constant 0 : index
    %c0_22 = arith.constant 0 : index
    %30 = vector.load %arg7[%c0_20, %c0_21, %c0_22] : memref<4x2x512xf32, #tpu.memory_space<vmem>>, vector<4x1x512xf32>
    %31 = vector.shape_cast %30 : vector<4x1x512xf32> to vector<4x512xf32>
    %32 = vector.shape_cast %29 : vector<4x512xf32> to vector<4x1x512xf32>
    tpu.vector_store %arg7[%c0_20, %c0_21, %c0_22], %32 {strides = array<i32>} : memref<4x2x512xf32, #tpu.memory_space<vmem>>, vector<4x1x512xf32>,
    %33 = vector.extract_strided_slice %27 {offsets = [0, 0, 64], sizes = [4, 8, 64], strides = [1, 1, 1]} : vector<4x8x128xf32> to vector<4x8x64xf32>
    %34 = vector.shape_cast %33 : vector<4x8x64xf32> to vector<4x512xf32>
    %c0_23 = arith.constant 0 : index
    %c1 = arith.constant 1 : index
    %c0_24 = arith.constant 0 : index
    %35 = vector.load %arg7[%c0_23, %c1, %c0_24] : memref<4x2x512xf32, #tpu.memory_space<vmem>>, vector<4x1x512xf32>
    %36 = vector.shape_cast %35 : vector<4x1x512xf32> to vector<4x512xf32>
    %37 = vector.shape_cast %34 : vector<4x512xf32> to vector<4x1x512xf32>
    tpu.vector_store %arg7[%c0_23, %c1, %c0_24], %37 {strides = array<i32>} : memref<4x2x512xf32, #tpu.memory_space<vmem>>, vector<4x1x512xf32>,
    return
  }
  func.func @transform_0(%arg0: i32) -> (i32, i32) {
    %c0_i32 = arith.constant 0 : i32
    %c0_i32_0 = arith.constant 0 : i32
    return %arg0, %c0_i32 : i32, i32
  }
  func.func @transform_1(%arg0: i32) -> (i32, i32) {
    %c0_i32 = arith.constant 0 : i32
    %c0_i32_0 = arith.constant 0 : i32
    %c0_i32_1 = arith.constant 0 : i32
    return %c0_i32, %c0_i32_0 : i32, i32
  }
  func.func @transform_2(%arg0: i32) -> (i32, i32) {
    %c0_i32 = arith.constant 0 : i32
    %c0_i32_0 = arith.constant 0 : i32
    %c0_i32_1 = arith.constant 0 : i32
    return %c0_i32, %c0_i32_0 : i32, i32
  }
  func.func @transform_3(%arg0: i32) -> (i32, i32) {
    %c0_i32 = arith.constant 0 : i32
    %c0_i32_0 = arith.constant 0 : i32
    %c0_i32_1 = arith.constant 0 : i32
    return %c0_i32, %c0_i32_0 : i32, i32
  }
  func.func @transform_4(%arg0: i32) -> (i32, i32) {
    %c0_i32 = arith.constant 0 : i32
    %c0_i32_0 = arith.constant 0 : i32
    %c0_i32_1 = arith.constant 0 : i32
    return %c0_i32, %c0_i32_0 : i32, i32
  }
  func.func @transform_5(%arg0: i32) -> (i32, i32) {
    %c0_i32 = arith.constant 0 : i32
    %c0_i32_0 = arith.constant 0 : i32
    %c0_i32_1 = arith.constant 0 : i32
    return %c0_i32, %c0_i32_0 : i32, i32
  }
  func.func @transform_6(%arg0: i32) -> (i32, i32, i32) {
    %c0_i32 = arith.constant 0 : i32
    %c0_i32_0 = arith.constant 0 : i32
    %c0_i32_1 = arith.constant 0 : i32
    return %arg0, %c0_i32, %c0_i32_0 : i32, i32, i32
  }
}

module attributes {stable_mosaic.version = 11 : i64} {
  func.func @_patch_expand_kernel(%arg0: i32, %arg1: memref<32x64xf32, #tpu.memory_space<vmem>>, %arg2: memref<64x128xbf16, #tpu.memory_space<vmem>>, %arg3: memref<128x8xf32, #tpu.memory_space<vmem>>, %arg4: memref<8x128xf32, #tpu.memory_space<vmem>>, %arg5: memref<1x128xf32, #tpu.memory_space<vmem>>, %arg6: memref<1x128xf32, #tpu.memory_space<vmem>>, %arg7: memref<4x2x8x64xf32, #tpu.memory_space<vmem>>) attributes {dimension_semantics = [#tpu.dimension_semantics<parallel>], iteration_bounds = array<i64: 4>, scalar_prefetch = 0 : i64, scratch_operands = 0 : i64, tpu.core_type = #tpu.core_type<tc>, window_params = [{transform_indices = @transform_0, window_bounds = array<i64: 32, 64>}, {pipeline_mode = #tpu.pipeline_mode<synchronous>, transform_indices = @transform_1, window_bounds = array<i64: 64, 128>}, {pipeline_mode = #tpu.pipeline_mode<synchronous>, transform_indices = @transform_2, window_bounds = array<i64: 128, 8>}, {pipeline_mode = #tpu.pipeline_mode<synchronous>, transform_indices = @transform_3, window_bounds = array<i64: 8, 128>}, {pipeline_mode = #tpu.pipeline_mode<synchronous>, transform_indices = @transform_4, window_bounds = array<i64: 1, 128>}, {pipeline_mode = #tpu.pipeline_mode<synchronous>, transform_indices = @transform_5, window_bounds = array<i64: 1, 128>}, {transform_indices = @transform_6, window_bounds = array<i64: 4, 2, 8, 64>}]} {
    %c0 = arith.constant 0 : index
    %c0_0 = arith.constant 0 : index
    %0 = vector.load %arg1[%c0, %c0_0] : memref<32x64xf32, #tpu.memory_space<vmem>>, vector<32x64xf32>
    %1 = arith.truncf %0 : vector<32x64xf32> to vector<32x64xbf16>
    %c0_1 = arith.constant 0 : index
    %c0_2 = arith.constant 0 : index
    %2 = vector.load %arg2[%c0_1, %c0_2] : memref<64x128xbf16, #tpu.memory_space<vmem>>, vector<64x128xbf16>
    %cst = arith.constant dense<0.000000e+00> : vector<32x128xf32>
    %3 = tpu.matmul %1, %2, %cst {dimension_numbers = #tpu.dot_dimension_numbers<[1], [0], [0], [1], [0, 0, 1, 1], [], []>} : vector<32x64xbf16>, vector<64x128xbf16>, vector<32x128xf32> -> vector<32x128xf32>
    %c0_3 = arith.constant 0 : index
    %c0_4 = arith.constant 0 : index
    %4 = vector.load %arg3[%c0_3, %c0_4] : memref<128x8xf32, #tpu.memory_space<vmem>>, vector<128x8xf32>
    %cst_5 = arith.constant dense<0.000000e+00> : vector<32x8xf32>
    %5 = tpu.matmul %3, %4, %cst_5 {dimension_numbers = #tpu.dot_dimension_numbers<[1], [0], [0], [1], [0, 0, 1, 1], [], []>} : vector<32x128xf32>, vector<128x8xf32>, vector<32x8xf32> -> vector<32x8xf32>
    %6 = arith.mulf %3, %3 : vector<32x128xf32>
    %c0_6 = arith.constant 0 : index
    %c0_7 = arith.constant 0 : index
    %7 = vector.load %arg3[%c0_6, %c0_7] : memref<128x8xf32, #tpu.memory_space<vmem>>, vector<128x8xf32>
    %cst_8 = arith.constant dense<0.000000e+00> : vector<32x8xf32>
    %8 = tpu.matmul %6, %7, %cst_8 {dimension_numbers = #tpu.dot_dimension_numbers<[1], [0], [0], [1], [0, 0, 1, 1], [], []>} : vector<32x128xf32>, vector<128x8xf32>, vector<32x8xf32> -> vector<32x8xf32>
    %9 = arith.mulf %5, %5 : vector<32x8xf32>
    %10 = arith.subf %8, %9 : vector<32x8xf32>
    %cst_9 = arith.constant 9.99999974E-6 : f32
    %11 = vector.broadcast %cst_9 : f32 to vector<32x8xf32>
    %12 = arith.addf %10, %11 : vector<32x8xf32>
    %13 = math.rsqrt %12 : vector<32x8xf32>
    %c0_10 = arith.constant 0 : index
    %c0_11 = arith.constant 0 : index
    %14 = vector.load %arg4[%c0_10, %c0_11] : memref<8x128xf32, #tpu.memory_space<vmem>>, vector<8x128xf32>
    %cst_12 = arith.constant dense<0.000000e+00> : vector<32x128xf32>
    %15 = tpu.matmul %13, %14, %cst_12 {dimension_numbers = #tpu.dot_dimension_numbers<[1], [0], [0], [1], [0, 0, 1, 1], [], []>} : vector<32x8xf32>, vector<8x128xf32>, vector<32x128xf32> -> vector<32x128xf32>
    %16 = arith.mulf %5, %13 : vector<32x8xf32>
    %c0_13 = arith.constant 0 : index
    %c0_14 = arith.constant 0 : index
    %17 = vector.load %arg4[%c0_13, %c0_14] : memref<8x128xf32, #tpu.memory_space<vmem>>, vector<8x128xf32>
    %cst_15 = arith.constant dense<0.000000e+00> : vector<32x128xf32>
    %18 = tpu.matmul %16, %17, %cst_15 {dimension_numbers = #tpu.dot_dimension_numbers<[1], [0], [0], [1], [0, 0, 1, 1], [], []>} : vector<32x8xf32>, vector<8x128xf32>, vector<32x128xf32> -> vector<32x128xf32>
    %19 = arith.mulf %3, %15 : vector<32x128xf32>
    %20 = arith.subf %19, %18 : vector<32x128xf32>
    %c0_16 = arith.constant 0 : index
    %c0_17 = arith.constant 0 : index
    %21 = vector.load %arg5[%c0_16, %c0_17] : memref<1x128xf32, #tpu.memory_space<vmem>>, vector<1x128xf32>
    %22 = vector.broadcast %21 : vector<1x128xf32> to vector<32x128xf32>
    %23 = arith.mulf %20, %22 : vector<32x128xf32>
    %c0_18 = arith.constant 0 : index
    %c0_19 = arith.constant 0 : index
    %24 = vector.load %arg6[%c0_18, %c0_19] : memref<1x128xf32, #tpu.memory_space<vmem>>, vector<1x128xf32>
    %25 = vector.broadcast %24 : vector<1x128xf32> to vector<32x128xf32>
    %26 = arith.addf %23, %25 : vector<32x128xf32>
    %27 = vector.shape_cast %26 : vector<32x128xf32> to vector<4x8x128xf32>
    %28 = vector.extract_strided_slice %27 {offsets = [0, 0, 0], sizes = [4, 8, 64], strides = [1, 1, 1]} : vector<4x8x128xf32> to vector<4x8x64xf32>
    %c0_20 = arith.constant 0 : index
    %c0_21 = arith.constant 0 : index
    %c0_22 = arith.constant 0 : index
    %c0_23 = arith.constant 0 : index
    %29 = vector.load %arg7[%c0_20, %c0_21, %c0_22, %c0_23] : memref<4x2x8x64xf32, #tpu.memory_space<vmem>>, vector<4x1x8x64xf32>
    %30 = vector.shape_cast %29 : vector<4x1x8x64xf32> to vector<4x8x64xf32>
    %31 = vector.shape_cast %28 : vector<4x8x64xf32> to vector<4x1x8x64xf32>
    tpu.vector_store %arg7[%c0_20, %c0_21, %c0_22, %c0_23], %31 {strides = array<i32>} : memref<4x2x8x64xf32, #tpu.memory_space<vmem>>, vector<4x1x8x64xf32>,
    %32 = vector.extract_strided_slice %27 {offsets = [0, 0, 64], sizes = [4, 8, 64], strides = [1, 1, 1]} : vector<4x8x128xf32> to vector<4x8x64xf32>
    %c0_24 = arith.constant 0 : index
    %c1 = arith.constant 1 : index
    %c0_25 = arith.constant 0 : index
    %c0_26 = arith.constant 0 : index
    %33 = vector.load %arg7[%c0_24, %c1, %c0_25, %c0_26] : memref<4x2x8x64xf32, #tpu.memory_space<vmem>>, vector<4x1x8x64xf32>
    %34 = vector.shape_cast %33 : vector<4x1x8x64xf32> to vector<4x8x64xf32>
    %35 = vector.shape_cast %32 : vector<4x8x64xf32> to vector<4x1x8x64xf32>
    tpu.vector_store %arg7[%c0_24, %c1, %c0_25, %c0_26], %35 {strides = array<i32>} : memref<4x2x8x64xf32, #tpu.memory_space<vmem>>, vector<4x1x8x64xf32>,
    return
  }
  func.func @transform_0(%arg0: i32) -> (i32, i32) {
    %c0_i32 = arith.constant 0 : i32
    %c0_i32_0 = arith.constant 0 : i32
    return %arg0, %c0_i32 : i32, i32
  }
  func.func @transform_1(%arg0: i32) -> (i32, i32) {
    %c0_i32 = arith.constant 0 : i32
    %c0_i32_0 = arith.constant 0 : i32
    %c0_i32_1 = arith.constant 0 : i32
    return %c0_i32, %c0_i32_0 : i32, i32
  }
  func.func @transform_2(%arg0: i32) -> (i32, i32) {
    %c0_i32 = arith.constant 0 : i32
    %c0_i32_0 = arith.constant 0 : i32
    %c0_i32_1 = arith.constant 0 : i32
    return %c0_i32, %c0_i32_0 : i32, i32
  }
  func.func @transform_3(%arg0: i32) -> (i32, i32) {
    %c0_i32 = arith.constant 0 : i32
    %c0_i32_0 = arith.constant 0 : i32
    %c0_i32_1 = arith.constant 0 : i32
    return %c0_i32, %c0_i32_0 : i32, i32
  }
  func.func @transform_4(%arg0: i32) -> (i32, i32) {
    %c0_i32 = arith.constant 0 : i32
    %c0_i32_0 = arith.constant 0 : i32
    %c0_i32_1 = arith.constant 0 : i32
    return %c0_i32, %c0_i32_0 : i32, i32
  }
  func.func @transform_5(%arg0: i32) -> (i32, i32) {
    %c0_i32 = arith.constant 0 : i32
    %c0_i32_0 = arith.constant 0 : i32
    %c0_i32_1 = arith.constant 0 : i32
    return %c0_i32, %c0_i32_0 : i32, i32
  }
  func.func @transform_6(%arg0: i32) -> (i32, i32, i32, i32) {
    %c0_i32 = arith.constant 0 : i32
    %c0_i32_0 = arith.constant 0 : i32
    %c0_i32_1 = arith.constant 0 : i32
    %c0_i32_2 = arith.constant 0 : i32
    return %arg0, %c0_i32, %c0_i32_0, %c0_i32_1 : i32, i32, i32, i32
  }
}

</mosaic_0001>

<bundles_post_ra>
// kernel: tpu_custom_call.1
= control target key start
LH: loop header
LB: loop body
LE: loop exit
PB: predicated region body
PF: predicated region fallthrough
CT: control target
= control target key end

     0   :  { %11 = vsyncpa [#allocation3], 0  ;;  %s2031_s0 = inlined_call_operand.vmem [shape: f32[128,64], index: 0, kind: input, shape index: {}]   ;;  %s2032_s1 = inlined_call_operand.vmem [shape: bf16[64,128], index: 1, kind: input, shape index: {}]   ;;  %s2033_s2 = inlined_call_operand.vmem [shape: f32[128,8], index: 2, kind: input, shape index: {}]   ;;  %s2034_s3 = inlined_call_operand.vmem [shape: f32[8,128], index: 3, kind: input, shape index: {}]   ;;  %s2035_s4 = inlined_call_operand.vmem [shape: f32[1,128], index: 4, kind: input, shape index: {}]   ;;  %s2036_s5 = inlined_call_operand.vmem [shape: f32[1,128], index: 5, kind: input, shape index: {}]   ;;  %s2037_s6 = inlined_call_operand.hbm [shape: f32[16,2,512], index: 6, kind: output, shape index: {}]  }
   0x1   :  { %13 = vsyncpa [#allocation3 + $0x1], 0  ;;  %s1440_s21 = smov 0   ;;  %s1442_s22 = smov 0  }
   0x2   :  { %s1444_s23 = smov 0   ;;  %s1446_s24 = smov 0  }
   0x3 LB: > { %s1461_s25 = sadd.s32 4294967295, %s1398_s24   ;;  %s1230_s26 = sadd.s32 4294967294, %s1398_s24   ;;  %s1398_s24 = sphi %s1446_s24, %s2045_s24   ;;  %s1394_s23 = sphi %s1444_s23, %s2044_s23   ;;  %s1390_s22 = sphi %s1442_s22, %s2043_s22   ;;  %s1386_s21 = sphi %s1440_s21, %s2042_s21  }
   0x4   : > { %s1465_s27 = sadd.s32 1, %s1398_s24   ;;  %s157_s28 = sadd.s32 1, %s1394_s23 }
   0x5   : > { %s154_s29 = ssub.s32 %s1398_s24, %s1465_s27  ;;  %p167_p0 = scmp.ne.s32.totalorder %s1394_s23, %s1390_s22 }
   0x6   : > { %p155_p1 = scmp.eq.s32.totalorder %s154_s29, 0  ;;  %p168_p2 = scmp.eq.s32.totalorder %s1461_s25, 3 }
   0x7   : > { %p173_p3 = scmp.ne.s32.totalorder %s1390_s22, %s1386_s21  ;;  %p174_p4 = scmp.eq.s32.totalorder %s1230_s26, 3 }
   0x8   : > { %s1476_s30 = scalar_select %p155_p1, %s1394_s23, %s157_s28  }
   0x9   : > { %p1478_p5 = por %p168_p2, %p167_p0  ;;  %p1482_p6 = por %p174_p4, %p173_p3 }
   0xa   : > { %p1233_p7 = scmp.ge.s32.totalorder %s1398_s24, 1  ;;  %p216_p8 = scmp.lt.s32.totalorder %s1398_s24, 5 }
   0xc   : > { %p217_p9 = pnand %p1233_p7, %p216_p8 }
   0xd   : > { %s1235_s11 = sshll.u32 (!%p217_p9), %s1461_s25, 2  ;;  %s1402_s16 = smov (!%p217_p9), 64  }
   0xe   : > { %220 = sbr.rel (%p217_p9) target bundleno = 784 (0x310), region = 44  ;;  %p247_p10 = scmp.lt.s32.totalorder (!%p217_p9), %s1235_s11, 15 }
   0xf   : > { %s243_s17 = sand.u32 (!%p217_p9), 1, %s1390_s22   ;;  %s1356_s15 = scalar_lea.hbm (!%p217_p9), %s2037_s6, 128 }
  0x10   : > { %s1234_s18 = sshll.u32 (!%p217_p9), %s243_s17, 5 }
  0x11   : > { %s1825_s19 = scalar_lea.vmem (!%p217_p9), [#allocation2], %s1234_s18 }
  0x12   : > { %s1165_s29 = sshll.u32 (!%p217_p9), %s1825_s19, 4  ;;  %s1166_s29 = int_to_ptr.vmem [resolvable:$true] %s1165_s29 }
  0x13   : > { %v1279_v0 = vld [vmem:[%s2032_s1 + $0x18] sm:$0xff]  ;;  %v332_v2 = vld [vmem:[%s2033_s2 + $0x70] sm:$0xff]  ;;  %s2047_s11 = smov (!%p247_p10, %s1235_s11), 15  ;;  %v331_v4 = vld [vmem:[%s2033_s2 + $0x68] sm:$0xff]  ;;  %vm292_vm0 = vcmask 523264   ;;  %vm449_vm3 = vcmask 64512  }
  0x14   : > { %v333_v1 = vld [vmem:[%s2033_s2 + $0x78] sm:$0xff]  ;;  %303 = vmatpush.bf16.msra.mxu0 %v1279_v0  ;;  %v1278_v3 = vld [vmem:[%s2032_s1 + $0x10] sm:$0xff]  ;;  %s1236_s20 = sshll.u32 %s2047_s11, 3  ;;  %v330_v5 = vld [vmem:[%s2033_s2 + $0x60] sm:$0xff]  ;;  %vm561_vm14 = vcmask 1047556   ;;  %vm821_vm15 = vcmask 1040384  }
  0x15   : > { %334 = vmatpush.msra.mxu1 %v333_v1  ;;  %367 = vmatpush.msra.mxu2 %v333_v1  ;;  %v1277_v6 = vld [vmem:[%s2032_s1 + $0x8] sm:$0xff]  ;;  %s1513_s13 = scalar_lea.vmem %s2031_s0, %s1236_s20  ;;  %v329_v7 = vld [vmem:[%s2033_s2 + $0x58] sm:$0xff]  ;;  %v328_v8 = vld [vmem:[%s2033_s2 + $0x50] sm:$0xff]  ;;  %s1281_s20 = sshll.u32 %s1461_s25, 5 }
  0x16   : > { %v1276_v9 = vld [vmem:[%s2032_s1] sm:$0xff]  ;;  %v255_v11 = vld [vmem:[%s1513_s13 + $0x8] sm:$0xff]  ;;  %v325_v15 = vld [vmem:[%s2033_s2 + $0x38] sm:$0xff]  ;;  %s1164_s25 = scalar_lea.hbm %s2037_s6, %s1281_s20 }
  0x17   : > { %335 = vmatpush.msra.mxu1 %v332_v2  ;;  %368 = vmatpush.msra.mxu2 %v332_v2  ;;  %v254_v10 = vld [vmem:[%s1513_s13] sm:$0xff]  ;;  %v327_v12 = vld [vmem:[%s2033_s2 + $0x48] sm:$0xff]  ;;  %v324_v16 = vld [vmem:[%s2033_s2 + $0x30] sm:$0xff]  ;;  %s1167_s9 = sshll.u32 %s1164_s25, 4  ;;  %s1168_s9 = int_to_ptr.hbm [resolvable:$true] %s1167_s9 }
  0x18   : > { %304 = vmatpush.bf16.msra.mxu0 %v1278_v3  ;;  %v258_v13 = vpack.c.bf16 %v255_v11, %v254_v10  ;;  %v326_v14 = vld [vmem:[%s2033_s2 + $0x40] sm:$0xff]  ;;  %v323_v17 = vld [vmem:[%s2033_s2 + $0x28] sm:$0xff]  ;;  %v321_v19 = vld [vmem:[%s2033_s2 + $0x18] sm:$0xff]  ;;  %s1350_s10 = sshra.s32 %s1168_s9, 4  ;;  %s1351_s10 = int_to_ptr.hbm [resolvable:$true] %s1350_s10 }
  0x19   : > { %336 = vmatpush.msra.mxu1 %v331_v4  ;;  %369 = vmatpush.msra.mxu2 %v331_v4  ;;  %v322_v18 = vld [vmem:[%s2033_s2 + $0x20] sm:$0xff]  ;;  %v320_v20 = vld [vmem:[%s2033_s2 + $0x10] sm:$0xff]  ;;  %v257_v22 = vld [vmem:[%s1513_s13 + $0x18] sm:$0xff]  ;;  %s1352_s12 = scalar_lea.hbm %s1351_s10, 32  ;;  %p1357_p0 = scmp.lt.s32.totalorder %s1351_s10, %s2037_s6 }
  0x1a   : > { %v256_v21 = vld [vmem:[%s1513_s13 + $0x10] sm:$0xff]  ;;  %v319_v23 = vld [vmem:[%s2033_s2 + $0x8] sm:$0xff]  ;;  %v318_v25 = vld [vmem:[%s2033_s2] sm:$0xff]  ;;  %s1152_s13 = scalar_lea.sflag [#allocation3], %s243_s17  ;;  %p1353_p11 = scmp.ne.s32.totalorder %s1351_s10, %s1352_s12 }
  0x1b   : > { %337 = vmatpush.msra.mxu1 %v330_v5  ;;  %370 = vmatpush.msra.mxu2 %v330_v5  ;;  %v259_v24 = vpack.c.bf16 %v257_v22, %v256_v21  ;;  %v448_v34 = vld [vmem:[%s2034_s3] sm:$0xff]  ;;  %p1358_p1 = scmp.lt.s32.totalorder %s1356_s15, %s1352_s12 }
  0x1c   : > { %305 = vmatpush.bf16.msra.mxu0 %v1277_v6  ;;  %477 = vmatpush.msra.mxu3 %v448_v34  ;;  %p1354_p12 = pnand %p1353_p11, %p1478_p5 }
  0x1d   : > { %338 = vmatpush.msra.mxu1 %v329_v7  ;;  %371 = vmatpush.msra.mxu2 %v329_v7  ;;  %p1359_p2 = por %p1358_p1, %p1357_p0 }
  0x1e   : > { %522 = vmatpush.msrb.mxu3 %v448_v34  ;;  %p1355_p13 = pneg %p1354_p12 }
  0x1f   : > { %339 = vmatpush.msra.mxu1 %v328_v8  ;;  %372 = vmatpush.msra.mxu2 %v328_v8 }
  0x20   : > { %306 = vmatpush.bf16.msra.mxu0 %v1276_v9  ;;  %p1360_p3 = pnand %p1359_p2, %p1355_p13 }
  0x21   : > { %340 = vmatpush.msra.mxu1 %v327_v12  ;;  %373 = vmatpush.msra.mxu2 %v327_v12 }
  0x23   : > { %341 = vmatpush.msra.mxu1 %v326_v14  ;;  %1253 = vmatmul.msk.bf16.vlgmr.msra.gmra.mxu0 %vm292_vm0, %v258_v13 }
  0x24   : > { %374 = vmatpush.msra.mxu2 %v326_v14 }
  0x25   : > { %342 = vmatpush.msra.mxu1 %v325_v15 }
  0x26   : > { %375 = vmatpush.msra.mxu2 %v325_v15 }
  0x27   : > { %343 = vmatpush.msra.mxu1 %v324_v16 }
  0x28   : > { %376 = vmatpush.msra.mxu2 %v324_v16 }
  0x29   : > { %344 = vmatpush.msra.mxu1 %v323_v17 }
  0x2a   : > { %377 = vmatpush.msra.mxu2 %v323_v17 }
  0x2b   : > { %345 = vmatpush.msra.mxu1 %v322_v18 }
  0x2c   : > { %378 = vmatpush.msra.mxu2 %v322_v18 }
  0x2d   : > { %346 = vmatpush.msra.mxu1 %v321_v19 }
  0x2e   : > { %379 = vmatpush.msra.mxu2 %v321_v19 }
  0x2f   : > { %347 = vmatpush.msra.mxu1 %v320_v20 }
  0x30   : > { %380 = vmatpush.msra.mxu2 %v320_v20 }
  0x31   : > { %348 = vmatpush.msra.mxu1 %v319_v23 }
  0x32   : > { %381 = vmatpush.msra.mxu2 %v319_v23 }
  0x33   : > { %1254 = vmatmul.msk.bf16.gmra.mxu0 %vm292_vm0, %v259_v24  ;;  %349 = vmatpush.msra.mxu1 %v318_v25 }
  0x34   : > { %382 = vmatpush.msra.mxu2 %v318_v25 }
  0xa0   : > { %v1560_v26 = vpop.f32.mrf.mxu0 }
  0xa1   : > { %350 = vmatmul.f32.vlgmr.msra.gmra.mxu1 %v1560_v26  ;;  %v363_v27 = vmul.f32 %v1560_v26, %v1560_v26 }
  0xa3   : > { %383 = vmatmul.f32.vlgmr.msra.gmra.mxu2 %v363_v27 }
  0xa8   : > { %v1565_v28 = vpop.f32.mrf.mxu0 }
  0xa9   : > { %353 = vmatmul.f32.gmra.mxu1 %v1565_v28  ;;  %v364_v29 = vmul.f32 %v1565_v28, %v1565_v28 }
  0xab   : > { %386 = vmatmul.f32.gmra.mxu2 %v364_v29 }
  0xb0   : > { %v1570_v30 = vpop.f32.mrf.mxu0 }
  0xb1   : > { %356 = vmatmul.f32.gmra.mxu1 %v1570_v30  ;;  %v365_v31 = vmul.f32 %v1570_v30, %v1570_v30 }
  0xb3   : > { %389 = vmatmul.f32.gmra.mxu2 %v365_v31  ;;  %v1610_v31 = vld [vmem:[%s2035_s4] ss:$0 sm:$0xff] }
  0xb8   : > { %v1575_v32 = vpop.f32.mrf.mxu0 }
  0xb9   : > { %359 = vmatmul.f32.gmra.mxu1 %v1575_v32  ;;  %v366_v33 = vmul.f32 %v1575_v32, %v1575_v32 }
  0xbb   : > { %392 = vmatmul.f32.gmra.mxu2 %v366_v33  ;;  %v1400_v33 = vmov 1983009808  }
  0xbc   : > { %v564_v34 = vunpack.c.l.s4 %v1400_v33 }
 0x11e   : > { %v1583_v35 = vpop.f32.mrf.mxu1 }
 0x11f   : > { %v396_v36 = vmul.f32 %v1583_v35, %v1583_v35 }
 0x126   : > { %v1587_v37 = vpop.f32.mrf.mxu1  ;;  %v384_v38 = vpop.f32.mrf.mxu2 }
 0x127   : > { %v400_v39 = vsub.f32 %v384_v38, %v396_v36  ;;  %v397_v41 = vmul.f32 %v1587_v37, %v1587_v37  ;;  %v1401_v38 = vmov 1934713408  }
 0x129   : > { %v404_v40 = vadd.f32 1e-05, %v400_v39  ;;  %v574_v39 = vunpack.c.l.s4 %v1401_v38 }
 0x12b   : > { %1328 = vrsqrt.f32 %v404_v40  ;;  %vm414_vm2 = vweird.f32 %v404_v40 }
 0x12e   : > { %v387_v42 = vpop.f32.mrf.mxu2  ;;  %v1591_v44 = vpop.f32.mrf.mxu1 }
 0x12f   : > { %v401_v43 = vsub.f32 %v387_v42, %v397_v41  ;;  %v398_v49 = vmul.f32 %v1591_v44, %v1591_v44  ;;  %v1618_v41 = vunpack.c.0.s8 %v564_v34  ;;  %v1621_v42 = vunpack.c.0.s8 %v574_v39 }
 0x131   : > { %v1329_v45 = vpop.eup %1328  ;;  %v405_v46 = vadd.f32 1e-05, %v401_v43 }
 0x132   : > { %v409_v47 = vmul.f32 %v1329_v45, %v404_v40  ;;  %vm415_vm1 = vweird.f32 %v1329_v45 }
 0x133   : > { %1330 = vrsqrt.f32 %v405_v46  ;;  %vm416_vm4 = vmor %vm414_vm2, %vm415_vm1  ;;  %vm424_vm6 = vweird.f32 %v405_v46  ;;  %vm823_vm1 = vcmask 1042434   ;;  %vm825_vm2 = vcmask 1041408  }
 0x134   : > { %v410_v48 = vmul.f32 %v1329_v45, %v409_v47 }
 0x136   : > { %v411_v50 = vmul.f32 0.5, %v410_v48  ;;  %v390_v51 = vpop.f32.mrf.mxu2  ;;  %v360_v57 = vpop.f32.mrf.mxu1 }
 0x137   : > { %v402_v52 = vsub.f32 %v390_v51, %v398_v49  ;;  %v399_v61 = vmul.f32 %v360_v57, %v360_v57 }
 0x138   : > { %v412_v53 = vsub.f32 1.5, %v411_v50 }
 0x139   : > { %v1331_v54 = vpop.eup %1330  ;;  %v406_v55 = vadd.f32 1e-05, %v402_v52 }
 0x13a   : > { %v419_v56 = vmul.f32 %v1331_v54, %v405_v46  ;;  %v413_v58 = vmul.f32 %v1329_v45, %v412_v53  ;;  %vm425_vm5 = vweird.f32 %v1331_v54 }
 0x13b   : > { %1332 = vrsqrt.f32 %v406_v55  ;;  %vm426_vm7 = vmor %vm424_vm6, %vm425_vm5  ;;  %vm434_vm9 = vweird.f32 %v406_v55 }
 0x13c   : > { %v420_v59 = vmul.f32 %v1331_v54, %v419_v56  ;;  %v417_v60 = vsel %vm416_vm4, %v1329_v45, %v413_v58 }
 0x13d   : > { %1255 = vmatmul.msk.f32.vlgmr.msra.gmra.mxu3 %vm449_vm3, %v417_v60  ;;  %v491_v19 = vmul.f32 %v417_v60, %v1583_v35 }
 0x13e   : > { %v421_v62 = vmul.f32 0.5, %v420_v59  ;;  %v393_v63 = vpop.f32.mrf.mxu2 }
 0x13f   : > { %v403_v0 = vsub.f32 %v393_v63, %v399_v61 }
 0x140   : > { %v422_v1 = vsub.f32 1.5, %v421_v62 }
 0x141   : > { %v1333_v2 = vpop.eup %1332  ;;  %v407_v3 = vadd.f32 1e-05, %v403_v0 }
 0x142   : > { %v429_v4 = vmul.f32 %v1333_v2, %v406_v55  ;;  %v423_v5 = vmul.f32 %v1331_v54, %v422_v1  ;;  %vm435_vm8 = vweird.f32 %v1333_v2 }
 0x143   : > { %1334 = vrsqrt.f32 %v407_v3  ;;  %vm436_vm10 = vmor %vm434_vm9, %vm435_vm8  ;;  %vm444_vm12 = vweird.f32 %v407_v3 }
 0x144   : > { %v430_v6 = vmul.f32 %v1333_v2, %v429_v4  ;;  %v427_v7 = vsel %vm426_vm7, %v1331_v54, %v423_v5 }
 0x145   : > { %1256 = vmatmul.msk.f32.gmra.mxu3 %vm449_vm3, %v427_v7  ;;  %v492_v20 = vmul.f32 %v427_v7, %v1587_v37  ;;  %v1615_v37 = vld [vmem:[%s2036_s5] ss:$0 sm:$0xff] }
 0x146   : > { %v431_v8 = vmul.f32 0.5, %v430_v6 }
 0x148   : > { %v432_v9 = vsub.f32 1.5, %v431_v8 }
 0x149   : > { %v1335_v10 = vpop.eup %1334 }
 0x14a   : > { %v439_v11 = vmul.f32 %v1335_v10, %v407_v3  ;;  %v433_v12 = vmul.f32 %v1333_v2, %v432_v9  ;;  %vm445_vm11 = vweird.f32 %v1335_v10 }
 0x14b   : > { %vm446_vm13 = vmor %vm444_vm12, %vm445_vm11 }
 0x14c   : > { %v440_v13 = vmul.f32 %v1335_v10, %v439_v11  ;;  %v437_v14 = vsel %vm436_vm10, %v1333_v2, %v433_v12 }
 0x14d   : > { %1257 = vmatmul.msk.f32.gmra.mxu3 %vm449_vm3, %v437_v14  ;;  %v493_v21 = vmul.f32 %v437_v14, %v1591_v44 }
 0x14e   : > { %v441_v15 = vmul.f32 0.5, %v440_v13 }
 0x150   : > { %v442_v16 = vsub.f32 1.5, %v441_v15 }
 0x152   : > { %v443_v17 = vmul.f32 %v1335_v10, %v442_v16 }
 0x154   : > { %v447_v18 = vsel %vm446_vm13, %v1335_v10, %v443_v17 }
 0x155   : > { %1258 = vmatmul.msk.f32.gmra.mxu3 %vm449_vm3, %v447_v18  ;;  %v494_v22 = vmul.f32 %v447_v18, %v360_v57 }
 0x15d   : > { %1259 = vmatmul.msk.f32.vlgmr.msrb.gmra.mxu3 %vm449_vm3, %v491_v19 }
 0x165   : > { %1260 = vmatmul.msk.f32.gmra.mxu3 %vm449_vm3, %v492_v20 }
 0x16d   : > { %1261 = vmatmul.msk.f32.gmra.mxu3 %vm449_vm3, %v493_v21 }
 0x175   : > { %1262 = vmatmul.msk.f32.gmra.mxu3 %vm449_vm3, %v494_v22 }
 0x1c0   : > { %v479_v23 = vpop.f32.mrf.mxu3 }
 0x1c1   : > { %v536_v29 = vmul.f32 %v479_v23, %v1560_v26 }
 0x1c8   : > { %v482_v24 = vpop.f32.mrf.mxu3 }
 0x1c9   : > { %v537_v43 = vmul.f32 %v482_v24, %v1565_v28 }
 0x1d0   : > { %v485_v25 = vpop.f32.mrf.mxu3 }
 0x1d1   : > { %v538_v60 = vmul.f32 %v485_v25, %v1570_v30 }
 0x1d8   : > { %v488_v27 = vpop.f32.mrf.mxu3 }
 0x1d9   : > { %v539_v13 = vmul.f32 %v488_v27, %v1575_v32 }
 0x1e0   : > { %v524_v35 = vpop.f32.mrf.mxu3 }
 0x1e1   : > { %v540_v36 = vsub.f32 %v536_v29, %v524_v35 }
 0x1e3   : > { %v548_v40 = vmul.f32 %v1610_v31, %v540_v36 }
 0x1e5   : > { %v556_v26 = vadd.f32 %v1615_v37, %v548_v40 }
 0x1e7   : > { %855 = vrot.lane.b32.xlu2 %v556_v26, %s1402_s16  ;;  %v560_v44 = vrot.slane %v556_v26, 4  ;;  %v566_v45 = vperm.slane %v556_v26, %v1618_v41 }
 0x1e8   : > { %v527_v46 = vpop.f32.mrf.mxu3 }
 0x1e9   : > { %v541_v47 = vsub.f32 %v537_v43, %v527_v46  ;;  %v1627_v48 = vperm.slane %v566_v45, %v1621_v42  ;;  %v571_v49 = vrot.slane %v566_v45, 4  ;;  %v562_v50 = vsel %vm561_vm14, 0.0, %v560_v44 }
 0x1ea   : > { %v570_v51 = vperm.slane %v562_v50, %v1618_v41 }
 0x1eb   : > { %v549_v52 = vmul.f32 %v1610_v31, %v541_v47  ;;  %v591_v28 = vrot.slane %v1627_v48, 4  ;;  %v572_v53 = vsel %vm561_vm14, 0.0, %v571_v49 }
 0x1ec   : > { %v581_v54 = vrot.slane %v570_v51, 4  ;;  %v1635_v55 = vperm.slane %v570_v51, %v1621_v42  ;;  %v1642_v59 = vperm.slane %v572_v53, %v1621_v42 }
 0x1ed   : > { %v592_v56 = vsel %vm561_vm14, 0.0, %v591_v28  ;;  %v557_v57 = vadd.f32 %v1615_v37, %v549_v52 }
 0x1ee   : > { %717 = vrot.lane.b32.xlu0 %v592_v56, %s1402_s16  ;;  %v582_v58 = vsel %vm561_vm14, 0.0, %v581_v54  ;;  %v595_v0 = vrot.slane %v1635_v55, 4  ;;  %v593_v5 = vrot.slane %v1642_v59, 4 }
 0x1ef   : > { %857 = vrot.lane.b32.xlu2 %v557_v57, %s1402_s16  ;;  %v599_v61 = vrot.slane %v557_v57, 4  ;;  %v1647_v62 = vperm.slane %v582_v58, %v1621_v42  ;;  %v604_v4 = vperm.slane %v557_v57, %v1618_v41 }
 0x1f0   : > { %v530_v63 = vpop.f32.mrf.mxu3  ;;  %v596_v11 = vsel %vm561_vm14, 0.0, %v595_v0  ;;  %v594_v14 = vsel %vm561_vm14, 0.0, %v593_v5 }
 0x1f1   : > { %v542_v1 = vsub.f32 %v538_v60, %v530_v63  ;;  %v597_v2 = vrot.slane %v1647_v62, 4  ;;  %v600_v3 = vsel %vm561_vm14, 0.0, %v599_v61  ;;  %v1664_v12 = vperm.slane %v604_v4, %v1621_v42 }
 0x1f2   : > { %v608_v30 = vperm.slane %v600_v3, %v1618_v41  ;;  %v609_v38 = vrot.slane %v604_v4, 4 }
 0x1f3   : > { %v550_v6 = vmul.f32 %v1610_v31, %v542_v1  ;;  %v598_v7 = vsel %vm561_vm14, 0.0, %v597_v2  ;;  %v629_v32 = vrot.slane %v1664_v12, 4 }
 0x1f4   : > { %765 = vrot.lane.b32.xlu1 %v598_v7, %s1402_s16  ;;  %v1659_v8 = vperm.slane %v608_v30, %v1621_v42  ;;  %v619_v9 = vrot.slane %v608_v30, 4  ;;  %v610_v43 = vsel %vm561_vm14, 0.0, %v609_v38 }
 0x1f5   : > { %v558_v10 = vadd.f32 %v1615_v37, %v550_v6  ;;  %v630_v33 = vsel %vm561_vm14, 0.0, %v629_v32  ;;  %v1702_v46 = vperm.slane %v610_v43, %v1621_v42 }
 0x1f6   : > { %749 = vrot.lane.b32.xlu0 %v596_v11, %s1402_s16  ;;  %v620_v15 = vsel %vm561_vm14, 0.0, %v619_v9  ;;  %v633_v17 = vrot.slane %v1659_v8, 4 }
 0x1f7   : > { %v637_v16 = vrot.slane %v558_v10, 4  ;;  %733 = vrot.lane.b32.xlu2 %v594_v14, %s1402_s16  ;;  %v1673_v18 = vperm.slane %v620_v15, %v1621_v42  ;;  %v642_v19 = vperm.slane %v558_v10, %v1618_v41  ;;  %v631_v28 = vrot.slane %v1702_v46, 4 }
 0x1f8   : > { %v533_v20 = vpop.f32.mrf.mxu3  ;;  %v634_v27 = vsel %vm561_vm14, 0.0, %v633_v17 }
 0x1f9   : > { %v543_v21 = vsub.f32 %v539_v13, %v533_v20  ;;  %v638_v22 = vsel %vm561_vm14, 0.0, %v637_v16  ;;  %v635_v23 = vrot.slane %v1673_v18, 4  ;;  %v1683_v29 = vperm.slane %v642_v19, %v1621_v42 }
 0x1fa   : > { %v646_v24 = vperm.slane %v638_v22, %v1618_v41  ;;  %v647_v45 = vrot.slane %v642_v19, 4  ;;  %v632_v57 = vsel %vm561_vm14, 0.0, %v631_v28 }
 0x1fb   : > { %v551_v25 = vmul.f32 %v1610_v31, %v543_v21  ;;  %v636_v35 = vsel %vm561_vm14, 0.0, %v635_v23  ;;  %v667_v31 = vrot.slane %v1683_v29, 4 }
 0x1fc   : > { %751 = vrot.lane.b32.xlu1 %v634_v27, %s1402_s16  ;;  %v1691_v36 = vperm.slane %v646_v24, %v1621_v42  ;;  %v657_v50 = vrot.slane %v646_v24, 4  ;;  %v648_v51 = vsel %vm561_vm14, 0.0, %v647_v45 }
 0x1fd   : > { %v559_v34 = vadd.f32 %v1615_v37, %v551_v25  ;;  %v668_v37 = vsel %vm561_vm14, 0.0, %v667_v31  ;;  %v1715_v56 = vperm.slane %v648_v51, %v1621_v42 }
 0x1fe   : > { %719 = vrot.lane.b32.xlu0 %v630_v33, %s1402_s16  ;;  %v671_v26 = vrot.slane %v1691_v36, 4  ;;  %v658_v54 = vsel %vm561_vm14, 0.0, %v657_v50 }
 0x1ff   : > { %767 = vrot.lane.b32.xlu2 %v636_v35, %s1402_s16  ;;  %v680_v39 = vperm.slane %v559_v34, %v1618_v41  ;;  %v675_v52 = vrot.slane %v559_v34, 4  ;;  %v1720_v58 = vperm.slane %v658_v54, %v1621_v42  ;;  %v669_v63 = vrot.slane %v1715_v56, 4 }
 0x200   : > { %v672_v47 = vsel %vm561_vm14, 0.0, %v671_v26 }
 0x201   : > { %v685_v40 = vrot.slane %v680_v39, 4  ;;  %v676_v60 = vsel %vm561_vm14, 0.0, %v675_v52  ;;  %v673_v1 = vrot.slane %v1720_v58, 4  ;;  %v670_v2 = vsel %vm561_vm14, 0.0, %v669_v63 }
 0x202   : > { %v684_v0 = vperm.slane %v676_v60, %v1618_v41  ;;  %v1731_v3 = vperm.slane %v680_v39, %v1621_v42 }
 0x203   : > { %v686_v44 = vsel %vm561_vm14, 0.0, %v685_v40  ;;  %v674_v5 = vsel %vm561_vm14, 0.0, %v673_v1 }
 0x204   : > { %721 = vrot.lane.b32.xlu1 %v668_v37, %s1402_s16  ;;  %v1707_v49 = vperm.slane %v686_v44, %v1621_v42  ;;  %v695_v4 = vrot.slane %v684_v0, 4  ;;  %v1736_v30 = vperm.slane %v684_v0, %v1621_v42  ;;  %v705_v6 = vrot.slane %v1731_v3, 4 }
 0x206   : > { %859 = vrot.lane.b32.xlu0 %v558_v10, %s1402_s16  ;;  %v707_v53 = vrot.slane %v1707_v49, 4  ;;  %v696_v7 = vsel %vm561_vm14, 0.0, %v695_v4  ;;  %v709_v9 = vrot.slane %v1736_v30, 4  ;;  %v706_v10 = vsel %vm561_vm14, 0.0, %v705_v6 }
 0x207   : > { %753 = vrot.lane.b32.xlu2 %v672_v47, %s1402_s16  ;;  %v1744_v11 = vperm.slane %v696_v7, %v1621_v42 }
 0x208   : > { %v708_v61 = vsel %vm561_vm14, 0.0, %v707_v53  ;;  %v710_v13 = vsel %vm561_vm14, 0.0, %v709_v9 }
 0x209   : > { %v711_v14 = vrot.slane %v1744_v11, 4 }
 0x20b   : > { %v712_v15 = vsel %vm561_vm14, 0.0, %v711_v14  ;;  %v840_v14 = vlaneseq }
 0x20c   : > { %861 = vrot.lane.b32.xlu1 %v559_v34, %s1402_s16 }
 0x20d   : > { %vm1818_vm3 = vcmp.lt.s32.totalorder %v840_v14, 512 }
 0x20e   : > { %735 = vrot.lane.b32.xlu0 %v632_v57, %s1402_s16 }
 0x20f   : > { %739 = vrot.lane.b32.xlu2 %v708_v61, %s1402_s16 }
 0x214   : > { %737 = vrot.lane.b32.xlu1 %v670_v2, %s1402_s16 }
 0x216   : > { %769 = vrot.lane.b32.xlu0 %v674_v5, %s1402_s16 }
 0x21c   : > { %723 = vrot.lane.b32.xlu1 %v706_v10, %s1402_s16 }
 0x21e   : > { %755 = vrot.lane.b32.xlu0 %v710_v13, %s1402_s16 }
 0x224   : > { %771 = vrot.lane.b32.xlu1 %v712_v15, %s1402_s16 }
 0x241   : > { %v856_v16 = vpop.permute.xlu2 %855 }
 0x242   : > { %v867_v17 = vrot.slane %v856_v16, 4  ;;  %v872_v19 = vperm.slane %v856_v16, %v1618_v41 }
 0x244   : > { %v868_v20 = vsel %vm561_vm14, 0.0, %v867_v17  ;;  %v877_v21 = vrot.slane %v872_v19, 4  ;;  %v1755_v32 = vperm.slane %v872_v19, %v1621_v42 }
 0x245   : > { %v876_v22 = vperm.slane %v868_v20, %v1618_v41 }
 0x246   : > { %v878_v23 = vsel %vm561_vm14, 0.0, %v877_v21  ;;  %v897_v24 = vrot.slane %v1755_v32, 4 }
 0x247   : > { %v887_v25 = vrot.slane %v876_v22, 4  ;;  %v1761_v27 = vperm.slane %v878_v23, %v1621_v42  ;;  %v1764_v33 = vperm.slane %v876_v22, %v1621_v42 }
 0x248   : > { %v898_v34 = vsel %vm561_vm14, 0.0, %v897_v24 }
 0x249   : > { %v858_v35 = vpop.permute.xlu2 %857  ;;  %1023 = vrot.lane.b32.xlu2 %v898_v34, %s1402_s16  ;;  %v899_v38 = vrot.slane %v1761_v27, 4  ;;  %v901_v31 = vrot.slane %v1764_v33, 4  ;;  %v888_v39 = vsel %vm561_vm14, 0.0, %v887_v25 }
 0x24a   : > { %v905_v40 = vrot.slane %v858_v35, 4  ;;  %v1772_v26 = vperm.slane %v858_v35, %v1618_v41  ;;  %v1775_v43 = vperm.slane %v888_v39, %v1621_v42 }
 0x24b   : > { %v900_v37 = vsel %vm561_vm14, 0.0, %v899_v38  ;;  %v902_v44 = vsel %vm561_vm14, 0.0, %v901_v31 }
 0x24c   : > { %v906_v45 = vsel %vm561_vm14, 0.0, %v905_v40  ;;  %v915_v47 = vrot.slane %v1772_v26, 4  ;;  %1039 = vrot.lane.b32.xlu0 %v900_v37, %s1402_s16  ;;  %1055 = vrot.lane.b32.xlu1 %v902_v44, %s1402_s16  ;;  %v903_v50 = vrot.slane %v1775_v43, 4 }
 0x24d   : > { %v914_v51 = vperm.slane %v906_v45, %v1618_v41 }
 0x24e   : > { %v916_v52 = vsel %vm561_vm14, 0.0, %v915_v47  ;;  %v904_v54 = vsel %vm561_vm14, 0.0, %v903_v50 }
 0x24f   : > { %v925_v28 = vrot.slane %v914_v51, 4  ;;  %v1787_v53 = vperm.slane %v916_v52, %v1621_v42  ;;  %v1791_v57 = vperm.slane %v914_v51, %v1621_v42 }
 0x251   : > { %1071 = vrot.lane.b32.xlu2 %v904_v54, %s1402_s16  ;;  %v937_v60 = vrot.slane %v1787_v53, 4  ;;  %v926_v61 = vsel %vm561_vm14, 0.0, %v925_v28  ;;  %v939_v2 = vrot.slane %v1791_v57, 4  ;;  %v734_v7 = vpop.permute.xlu2 %733 }
 0x252   : > { %v1797_v63 = vperm.slane %v926_v61, %v1621_v42  ;;  %v781_v10 = vsel %vm292_vm0, %v1642_v59, %v734_v7 }
 0x253   : > { %v938_v0 = vsel %vm561_vm14, 0.0, %v937_v60  ;;  %v940_v5 = vsel %vm561_vm14, 0.0, %v939_v2  ;;  %v809_v19 = vrot.slane %v781_v10, 7 }
 0x254   : > { %1041 = vrot.lane.b32.xlu1 %v938_v0, %s1402_s16  ;;  %v941_v1 = vrot.slane %v1797_v63, 4 }
 0x256   : > { %v942_v4 = vsel %vm561_vm14, 0.0, %v941_v1 }
 0x257   : > { %1073 = vrot.lane.b32.xlu0 %v942_v4, %s1402_s16 }
 0x259   : > { %1057 = vrot.lane.b32.xlu2 %v940_v5, %s1402_s16  ;;  %v768_v34 = vpop.permute.xlu2 %767 }
 0x25a   : > { %v790_v45 = vsel %vm292_vm0, %v1673_v18, %v768_v34 }
 0x25b   : > { %v814_v18 = vrot.slane %v790_v45, 5 }
 0x260   : > { %v718_v6 = vpop.permute.xlu0 %717 }
 0x261   : > { %v777_v16 = vsel %vm292_vm0, %v1627_v48, %v718_v6 }
 0x266   : > { %v766_v9 = vpop.permute.xlu1 %765 }
 0x267   : > { %v789_v13 = vsel %vm292_vm0, %v1647_v62, %v766_v9  ;;  %v822_v62 = vsel %vm821_vm15, %v777_v16, %v809_v19 }
 0x268   : > { %v750_v15 = vpop.permute.xlu0 %749  ;;  %v811_v20 = vrot.slane %v789_v13, 5  ;;  %v754_v13 = vpop.permute.xlu2 %753 }
 0x269   : > { %v785_v17 = vsel %vm292_vm0, %v1635_v55, %v750_v15 }
 0x26a   : > { %v810_v21 = vrot.slane %v785_v17, 6 }
 0x26c   : > { %v824_v22 = vsel %vm823_vm1, %v810_v21, %v811_v20  ;;  %v787_v21 = vsel %vm292_vm0, %v1691_v36, %v754_v13 }
 0x26d   : > { %v826_v23 = vsel %vm825_vm2, %v822_v62, %v824_v22 }
 0x26e   : > { %844 = vst.msk [vmem:[%s1825_s19] ss:$2 sm:$0xf] %vm1818_vm3, %v826_v23  ;;  %v752_v48 = vpop.permute.xlu1 %751 }
 0x26f   : > { %v786_v37 = vsel %vm292_vm0, %v1659_v8, %v752_v48 }
 0x270   : > { %v720_v55 = vpop.permute.xlu0 %719  ;;  %v813_v60 = vrot.slane %v786_v37, 6 }
 0x271   : > { %v778_v14 = vsel %vm292_vm0, %v1664_v12, %v720_v55 }
 0x276   : > { %v722_v24 = vpop.permute.xlu1 %721 }
 0x277   : > { %v779_v45 = vsel %vm292_vm0, %v1683_v29, %v722_v24 }
 0x278   : > { %v860_v25 = vpop.permute.xlu0 %859 }
 0x279   : > { %v943_v35 = vrot.slane %v860_v25, 4  ;;  %v1831_v38 = vperm.slane %v860_v25, %v1618_v41 }
 0x27b   : > { %v944_v31 = vsel %vm561_vm14, 0.0, %v943_v35  ;;  %v953_v39 = vrot.slane %v1831_v38, 4 }
 0x27c   : > { %v952_v40 = vperm.slane %v944_v31, %v1618_v41 }
 0x27d   : > { %v954_v44 = vsel %vm561_vm14, 0.0, %v953_v39 }
 0x27e   : > { %v963_v47 = vrot.slane %v952_v40, 4  ;;  %v862_v50 = vpop.permute.xlu1 %861  ;;  %v1842_v51 = vperm.slane %v954_v44, %v1621_v42  ;;  %v1845_v52 = vperm.slane %v952_v40, %v1621_v42  ;;  %v816_v40 = vrot.slane %v787_v21, 6 }
 0x27f   : > { %v981_v28 = vrot.slane %v862_v50, 4  ;;  %v986_v54 = vperm.slane %v862_v50, %v1618_v41 }
 0x280   : > { %v736_v61 = vpop.permute.xlu0 %735  ;;  %v975_v8 = vrot.slane %v1842_v51, 4  ;;  %v977_v0 = vrot.slane %v1845_v52, 4  ;;  %v964_v1 = vsel %vm561_vm14, 0.0, %v963_v47 }
 0x281   : > { %v982_v2 = vsel %vm561_vm14, 0.0, %v981_v28  ;;  %v991_v4 = vrot.slane %v986_v54, 4  ;;  %v782_v5 = vsel %vm292_vm0, %v1702_v46, %v736_v61  ;;  %v1863_v46 = vperm.slane %v964_v1, %v1621_v42 }
 0x282   : > { %v990_v6 = vperm.slane %v982_v2, %v1618_v41  ;;  %v812_v7 = vrot.slane %v782_v5, 7  ;;  %v976_v9 = vsel %vm561_vm14, 0.0, %v975_v8  ;;  %v978_v10 = vsel %vm561_vm14, 0.0, %v977_v0  ;;  %v740_v0 = vpop.permute.xlu2 %739 }
 0x283   : > { %v992_v15 = vsel %vm561_vm14, 0.0, %v991_v4  ;;  %1043 = vrot.lane.b32.xlu2 %v976_v9, %s1402_s16  ;;  %1059 = vrot.lane.b32.xlu0 %v978_v10, %s1402_s16  ;;  %v828_v41 = vsel %vm823_vm1, %v813_v60, %v814_v18  ;;  %v979_v12 = vrot.slane %v1863_v46, 4  ;;  %v1900_v47 = vperm.slane %v986_v54, %v1621_v42 }
 0x284   : > { %v1001_v16 = vrot.slane %v990_v6, 4  ;;  %v827_v17 = vsel %vm821_vm15, %v778_v14, %v812_v7  ;;  %v1868_v19 = vperm.slane %v992_v15, %v1621_v42  ;;  %v1886_v34 = vperm.slane %v990_v6, %v1621_v42 }
 0x285   : > { %v829_v20 = vsel %vm825_vm2, %v827_v17, %v828_v41  ;;  %v980_v55 = vsel %vm561_vm14, 0.0, %v979_v12  ;;  %v1915_v54 = vperm.slane %v1831_v38, %v1621_v42  ;;  %v1011_v8 = vrot.slane %v1900_v47, 4 }
 0x286   : > { %1263 = vst.msk [vmem:[%s1825_s19 + $0x8] ss:$2 sm:$0xf] %vm1818_vm3, %v829_v20  ;;  %v738_v62 = vpop.permute.xlu1 %737  ;;  %v1013_v22 = vrot.slane %v1868_v19, 4  ;;  %v1002_v23 = vsel %vm561_vm14, 0.0, %v1001_v16  ;;  %1075 = vrot.lane.b32.xlu1 %v980_v55, %s1402_s16  ;;  %v1015_v50 = vrot.slane %v1886_v34, 4 }
 0x287   : > { %v783_v48 = vsel %vm292_vm0, %v1715_v56, %v738_v62  ;;  %v1883_v25 = vperm.slane %v1002_v23, %v1621_v42  ;;  %v1894_v56 = vperm.slane %v1772_v26, %v1621_v42  ;;  %v1012_v2 = vsel %vm561_vm14, 0.0, %v1011_v8 }
 0x288   : > { %v815_v36 = vrot.slane %v783_v48, 7  ;;  %v770_v35 = vpop.permute.xlu0 %769  ;;  %v1014_v44 = vsel %vm561_vm14, 0.0, %v1013_v22  ;;  %v1016_v61 = vsel %vm561_vm14, 0.0, %v1015_v50  ;;  %v973_v4 = vrot.slane %v1915_v54, 4 }
 0x289   : > { %v791_v31 = vsel %vm292_vm0, %v1720_v58, %v770_v35  ;;  %v1017_v39 = vrot.slane %v1883_v25, 4  ;;  %v935_v24 = vrot.slane %v1894_v56, 4  ;;  %v784_v42 = vsel %vm292_vm0, %v1707_v49, %v740_v0 }
 0x28a   : > { %v817_v37 = vrot.slane %v791_v31, 5  ;;  %v830_v28 = vsel %vm821_vm15, %v779_v45, %v815_v36  ;;  %v974_v7 = vsel %vm561_vm14, 0.0, %v973_v4  ;;  %v818_v10 = vrot.slane %v784_v42, 7 }
 0x28b   : > { %1045 = vrot.lane.b32.xlu0 %v1014_v44, %s1402_s16  ;;  %v1018_v58 = vsel %vm561_vm14, 0.0, %v1017_v39  ;;  %v936_v18 = vsel %vm561_vm14, 0.0, %v935_v24 }
 0x28c   : > { %v831_v26 = vsel %vm823_vm1, %v816_v40, %v817_v37  ;;  %1077 = vrot.lane.b32.xlu2 %v1018_v58, %s1402_s16 }
 0x28d   : > { %v832_v60 = vsel %vm825_vm2, %v830_v28, %v831_v26 }
 0x28e   : > { %1264 = vst.msk [vmem:[%s1825_s19 + $0x10] ss:$2 sm:$0xf] %vm1818_vm3, %v832_v60  ;;  %v724_v29 = vpop.permute.xlu1 %723  ;;  %1061 = vrot.lane.b32.xlu1 %v1016_v61, %s1402_s16 }
 0x28f   : > { %v780_v6 = vsel %vm292_vm0, %v1731_v3, %v724_v29 }
 0x290   : > { %v756_v1 = vpop.permute.xlu0 %755  ;;  %v833_v15 = vsel %vm821_vm15, %v780_v6, %v818_v10 }
 0x291   : > { %v788_v38 = vsel %vm292_vm0, %v1736_v30, %v756_v1 }
 0x292   : > { %v819_v13 = vrot.slane %v788_v38, 6 }
 0x293   : > { %1025 = vrot.lane.b32.xlu0 %v936_v18, %s1402_s16 }
 0x294   : > { %1029 = vrot.lane.b32.xlu2 %v1012_v2, %s1402_s16 }
 0x296   : > { %v772_v5 = vpop.permute.xlu1 %771  ;;  %1027 = vrot.lane.b32.xlu1 %v974_v7, %s1402_s16 }
 0x297   : > { %v792_v9 = vsel %vm292_vm0, %v1744_v11, %v772_v5 }
 0x298   : > { %v820_v14 = vrot.slane %v792_v9, 5 }
 0x29a   : > { %v834_v49 = vsel %vm823_vm1, %v819_v13, %v820_v14 }
 0x29b   : > { %v835_v30 = vsel %vm825_vm2, %v833_v15, %v834_v49 }
 0x29c   : > { %1265 = vst.msk [vmem:[%s1825_s19 + $0x18] ss:$2 sm:$0xf] %vm1818_vm3, %v835_v30 }
 0x2a3   : > { %v1024_v3 = vpop.permute.xlu2 %1023 }
 0x2a4   : > { %v1083_v23 = vsel %vm292_vm0, %v1755_v32, %v1024_v3 }
 0x2ab   : > { %v1072_v41 = vpop.permute.xlu2 %1071 }
 0x2ac   : > { %v1095_v11 = vsel %vm292_vm0, %v1775_v43, %v1072_v41 }
 0x2ad   : > { %v1117_v21 = vrot.slane %v1095_v11, 5 }
 0x2b3   : > { %v1058_v36 = vpop.permute.xlu2 %1057 }
 0x2b4   : > { %v1092_v45 = vsel %vm292_vm0, %v1791_v57, %v1058_v36 }
 0x2b5   : > { %v1119_v24 = vrot.slane %v1092_v45, 6 }
 0x2be   : > { %v1040_v16 = vpop.permute.xlu0 %1039  ;;  %v1056_v17 = vpop.permute.xlu1 %1055 }
 0x2bf   : > { %v1087_v20 = vsel %vm292_vm0, %v1761_v27, %v1040_v16  ;;  %v1091_v12 = vsel %vm292_vm0, %v1764_v33, %v1056_v17 }
 0x2c0   : > { %v1115_v62 = vrot.slane %v1087_v20, 7  ;;  %v1116_v22 = vrot.slane %v1091_v12, 6 }
 0x2c2   : > { %v1127_v48 = vsel %vm821_vm15, %v1083_v23, %v1115_v62  ;;  %v1128_v55 = vsel %vm823_vm1, %v1116_v22, %v1117_v21 }
 0x2c3   : > { %v1129_v43 = vsel %vm825_vm2, %v1127_v48, %v1128_v55 }
 0x2c4   : > { %1266 = vst.msk [vmem:[%s1825_s19 + $0x1] ss:$2 sm:$0xf] %vm1818_vm3, %v1129_v43 }
 0x2c6   : > { %v1042_v33 = vpop.permute.xlu1 %1041 }
 0x2c7   : > { %v1088_v50 = vsel %vm292_vm0, %v1787_v53, %v1042_v33 }
 0x2c8   : > { %v1118_v8 = vrot.slane %v1088_v50, 7 }
 0x2c9   : > { %v1074_v27 = vpop.permute.xlu0 %1073 }
 0x2ca   : > { %v1096_v32 = vsel %vm292_vm0, %v1797_v63, %v1074_v27 }
 0x2cb   : > { %v1120_v28 = vrot.slane %v1096_v32, 5 }
 0x2dd   : > { %v1044_v35 = vpop.permute.xlu2 %1043 }
 0x2e6   : > { %v1078_v39 = vpop.permute.xlu2 %1077 }
 0x2e7   : > { %v1098_v58 = vsel %vm292_vm0, %v1883_v25, %v1078_v39 }
 0x2e8   : > { %v1126_v61 = vrot.slane %v1098_v58, 5 }
 0x2ee   : > { %v1030_v26 = vpop.permute.xlu2 %1029 }
 0x2ef   : > { %v1086_v57 = vsel %vm292_vm0, %v1900_v47, %v1030_v26  ;;  %v1089_v47 = vsel %vm292_vm0, %v1842_v51, %v1044_v35 }
 0x2f0   : > { %v1121_v51 = vrot.slane %v1089_v47, 7 }
 0x2f5   : > { %v1060_v31 = vpop.permute.xlu0 %1059 }
 0x2f8   : > { %v1076_v40 = vpop.permute.xlu1 %1075 }
 0x2f9   : > { %v1097_v53 = vsel %vm292_vm0, %v1863_v46, %v1076_v40  ;;  %v1093_v46 = vsel %vm292_vm0, %v1845_v52, %v1060_v31 }
 0x2fa   : > { %v1123_v42 = vrot.slane %v1097_v53, 5  ;;  %v1122_v52 = vrot.slane %v1093_v46, 6 }
 0x2fc   : > { %v1134_v6 = vsel %vm823_vm1, %v1122_v52, %v1123_v42 }
 0x2fd   : > { %v1046_v37 = vpop.permute.xlu0 %1045 }
 0x2fe   : > { %v1090_v44 = vsel %vm292_vm0, %v1868_v19, %v1046_v37 }
 0x2ff   : > { %v1124_v60 = vrot.slane %v1090_v44, 7 }
 0x300   : > { %v1062_v29 = vpop.permute.xlu1 %1061 }
 0x301   : > { %v1094_v63 = vsel %vm292_vm0, %v1886_v34, %v1062_v29  ;;  %v1131_v34 = vsel %vm823_vm1, %v1119_v24, %v1120_v28  ;;  %v1136_v0 = vsel %vm821_vm15, %v1086_v57, %v1124_v60 }
 0x302   : > { %v1125_v19 = vrot.slane %v1094_v63, 6 }
 0x304   : > { %v1137_v1 = vsel %vm823_vm1, %v1125_v19, %v1126_v61 }
 0x305   : > { %v1026_v25 = vpop.permute.xlu0 %1025  ;;  %v1138_v2 = vsel %vm825_vm2, %v1136_v0, %v1137_v1 }
 0x306   : > { %v1084_v18 = vsel %vm292_vm0, %v1894_v56, %v1026_v25  ;;  %1269 = vst.msk [vmem:[%s1825_s19 + $0x19] ss:$2 sm:$0xf] %vm1818_vm3, %v1138_v2 }
 0x307   : > { %v1130_v4 = vsel %vm821_vm15, %v1084_v18, %v1118_v8 }
 0x308   : > { %v1132_v38 = vsel %vm825_vm2, %v1130_v4, %v1131_v34  ;;  %v1028_v56 = vpop.permute.xlu1 %1027 }
 0x309   : > { %1267 = vst.msk [vmem:[%s1825_s19 + $0x9] ss:$2 sm:$0xf] %vm1818_vm3, %v1132_v38  ;;  %v1085_v5 = vsel %vm292_vm0, %v1915_v54, %v1028_v56 }
 0x30a   : > { %v1133_v7 = vsel %vm821_vm15, %v1085_v5, %v1121_v51 }
 0x30b   : > { %v1135_v9 = vsel %vm825_vm2, %v1133_v7, %v1134_v6 }
 0x30c   : > { %1268 = vst.msk [vmem:[%s1825_s19 + $0x11] ss:$2 sm:$0xf] %vm1818_vm3, %v1135_v9 }
 0x30d   : > { %1363 = shalt.err (!%p1360_p3)
}
 0x30e   : > { %s1403_s17 = smov 128   ;;  %s1404_s19 = smov 8  }
 0x30f   : > { %1282 = dma.vmem_to_hbm [thread:$0]  (%p1478_p5), %s1166_s29, 512, %s1168_s9, %s1152_s13, %s1403_s17, %s1403_s17, %s1404_s19  }
 0x310 PF: > { %p1288_p4 = scmp.ge.s32.totalorder %s1398_s24, 2  ;;  %s1182_s20 = sand.u32 1, %s1386_s21  }
 0x311   : > { %s1183_s26 = scalar_lea.sflag [#allocation3], %s1182_s20 }
 0x312   : > { %p1285_p7 = pnand %p1288_p4, %p1482_p6 }
 0x314   : > { %p1286_p8 = pneg %p1285_p7 }
 0x316   : > { %1381 = dma.done.wait (%p1286_p8), %s1183_s26, 512  }
 0x317   : > { %1383 = vsyncadd (%p1286_p8), %s1183_s26, 4294966784  ;;  %p16_p9 = scmp.ge.s32.totalorder %s1465_s27, 6   ;;  %s2042_s21 = smov %s1390_s22 }
 0x318   : > { %s2043_s22 = smov %s1394_s23  ;;  %s2044_s23 = smov %s1476_s30 }
 0x319   : > { %s2045_s24 = smov %s1465_s27  ;;  %18 = sbr.rel (!%p16_p9) target bundleno = 3 (0x3), region = 86 }
 0x31e   :  { %1189 = vsyncpa [#allocation3], 1 }
 0x31f   :  { %1191 = vsyncpa [#allocation3 + $0x1], 1 }

// kernel: tpu_custom_call.1
= control target key start
LH: loop header
LB: loop body
LE: loop exit
PB: predicated region body
PF: predicated region fallthrough
CT: control target
= control target key end

     0   :  { %11 = vsyncpa [#allocation3], 0  ;;  %s1098_s0 = inlined_call_operand.vmem [shape: f32[128,64], index: 0, kind: input, shape index: {}]   ;;  %s1099_s1 = inlined_call_operand.vmem [shape: bf16[64,128], index: 1, kind: input, shape index: {}]   ;;  %s1100_s2 = inlined_call_operand.vmem [shape: f32[128,8], index: 2, kind: input, shape index: {}]   ;;  %s1101_s3 = inlined_call_operand.vmem [shape: f32[8,128], index: 3, kind: input, shape index: {}]   ;;  %s1102_s4 = inlined_call_operand.vmem [shape: f32[1,128], index: 4, kind: input, shape index: {}]   ;;  %s1103_s5 = inlined_call_operand.vmem [shape: f32[1,128], index: 5, kind: input, shape index: {}]   ;;  %s1104_s6 = inlined_call_operand.hbm [shape: f32[16,2,8,64], index: 6, kind: output, shape index: {}]  }
   0x1   :  { %13 = vsyncpa [#allocation3 + $0x1], 0  ;;  %s867_s21 = smov 0   ;;  %s869_s22 = smov 0  }
   0x2   :  { %s871_s23 = smov 0   ;;  %s873_s24 = smov 0  }
   0x3 LB: > { %s888_s25 = sadd.s32 4294967295, %s827_s24   ;;  %s664_s26 = sadd.s32 4294967294, %s827_s24   ;;  %s827_s24 = sphi %s873_s24, %s1110_s24   ;;  %s823_s23 = sphi %s871_s23, %s1109_s23   ;;  %s819_s22 = sphi %s869_s22, %s1108_s22   ;;  %s815_s21 = sphi %s867_s21, %s1107_s21  }
   0x4   : > { %s892_s27 = sadd.s32 1, %s827_s24   ;;  %s157_s28 = sadd.s32 1, %s823_s23 }
   0x5   : > { %s154_s29 = ssub.s32 %s827_s24, %s892_s27  ;;  %p167_p0 = scmp.ne.s32.totalorder %s823_s23, %s819_s22 }
   0x6   : > { %p155_p1 = scmp.eq.s32.totalorder %s154_s29, 0  ;;  %p168_p2 = scmp.eq.s32.totalorder %s888_s25, 3 }
   0x7   : > { %p173_p3 = scmp.ne.s32.totalorder %s819_s22, %s815_s21  ;;  %p174_p4 = scmp.eq.s32.totalorder %s664_s26, 3 }
   0x8   : > { %s903_s30 = scalar_select %p155_p1, %s823_s23, %s157_s28  }
   0x9   : > { %p905_p5 = por %p168_p2, %p167_p0  ;;  %p909_p6 = por %p174_p4, %p173_p3 }
   0xa   : > { %p667_p7 = scmp.ge.s32.totalorder %s827_s24, 1  ;;  %p216_p8 = scmp.lt.s32.totalorder %s827_s24, 5 }
   0xc   : > { %p217_p9 = pnand %p667_p7, %p216_p8 }
   0xd   : > { %s669_s11 = sshll.u32 (!%p217_p9), %s888_s25, 2  ;;  %s243_s12 = sand.u32 (!%p217_p9), 1, %s819_s22  }
   0xe   : > { %220 = sbr.rel (%p217_p9) target bundleno = 630 (0x276), region = 44  ;;  %p247_p10 = scmp.lt.s32.totalorder (!%p217_p9), %s669_s11, 15 }
   0xf   : > { %s668_s17 = sshll.u32 (!%p217_p9), %s243_s12, 6  ;;  %s829_s18 = smov (!%p217_p9), 64  }
  0x10   : > { %s1044_s19 = scalar_lea.vmem (!%p217_p9), [#allocation2], %s668_s17  ;;  %s586_s10 = scalar_lea.sflag (!%p217_p9), [#allocation3], %s243_s12 }
  0x11   : > { %s599_s9 = sshll.u32 (!%p217_p9), %s1044_s19, 4  ;;  %s785_s16 = scalar_lea.hbm (!%p217_p9), %s1104_s6, 256  ;;  %s600_s9 = int_to_ptr.vmem [resolvable:$true] %s599_s9 }
  0x13   : > { %v710_v0 = vld [vmem:[%s1099_s1 + $0x18] sm:$0xff]  ;;  %v332_v2 = vld [vmem:[%s1100_s2 + $0x70] sm:$0xff]  ;;  %s1112_s11 = smov (!%p247_p10, %s669_s11), 15  ;;  %v331_v4 = vld [vmem:[%s1100_s2 + $0x68] sm:$0xff]  ;;  %vm292_vm0 = vcmask 523264   ;;  %vm449_vm3 = vcmask 64512  }
  0x14   : > { %v333_v1 = vld [vmem:[%s1100_s2 + $0x78] sm:$0xff]  ;;  %303 = vmatpush.bf16.msra.mxu0 %v710_v0  ;;  %v709_v3 = vld [vmem:[%s1099_s1 + $0x10] sm:$0xff]  ;;  %s670_s20 = sshll.u32 %s1112_s11, 3  ;;  %v330_v5 = vld [vmem:[%s1100_s2 + $0x60] sm:$0xff] }
  0x15   : > { %334 = vmatpush.msra.mxu1 %v333_v1  ;;  %367 = vmatpush.msra.mxu2 %v333_v1  ;;  %v708_v6 = vld [vmem:[%s1099_s1 + $0x8] sm:$0xff]  ;;  %s940_s13 = scalar_lea.vmem %s1098_s0, %s670_s20  ;;  %v329_v7 = vld [vmem:[%s1100_s2 + $0x58] sm:$0xff]  ;;  %v328_v8 = vld [vmem:[%s1100_s2 + $0x50] sm:$0xff]  ;;  %s712_s20 = sshll.u32 %s888_s25, 6 }
  0x16   : > { %v707_v9 = vld [vmem:[%s1099_s1] sm:$0xff]  ;;  %v255_v11 = vld [vmem:[%s940_s13 + $0x8] sm:$0xff]  ;;  %v325_v15 = vld [vmem:[%s1100_s2 + $0x38] sm:$0xff]  ;;  %s598_s29 = scalar_lea.hbm %s1104_s6, %s712_s20 }
  0x17   : > { %335 = vmatpush.msra.mxu1 %v332_v2  ;;  %368 = vmatpush.msra.mxu2 %v332_v2  ;;  %v254_v10 = vld [vmem:[%s940_s13] sm:$0xff]  ;;  %v327_v12 = vld [vmem:[%s1100_s2 + $0x48] sm:$0xff]  ;;  %v324_v16 = vld [vmem:[%s1100_s2 + $0x30] sm:$0xff] }
  0x18   : > { %304 = vmatpush.bf16.msra.mxu0 %v709_v3  ;;  %v258_v13 = vpack.c.bf16 %v255_v11, %v254_v10  ;;  %v326_v14 = vld [vmem:[%s1100_s2 + $0x40] sm:$0xff]  ;;  %v323_v17 = vld [vmem:[%s1100_s2 + $0x28] sm:$0xff]  ;;  %v321_v19 = vld [vmem:[%s1100_s2 + $0x18] sm:$0xff] }
  0x19   : > { %336 = vmatpush.msra.mxu1 %v331_v4  ;;  %369 = vmatpush.msra.mxu2 %v331_v4  ;;  %v322_v18 = vld [vmem:[%s1100_s2 + $0x20] sm:$0xff]  ;;  %v320_v20 = vld [vmem:[%s1100_s2 + $0x10] sm:$0xff]  ;;  %v257_v22 = vld [vmem:[%s940_s13 + $0x18] sm:$0xff] }
  0x1a   : > { %v256_v21 = vld [vmem:[%s940_s13 + $0x10] sm:$0xff]  ;;  %v319_v23 = vld [vmem:[%s1100_s2 + $0x8] sm:$0xff]  ;;  %v318_v25 = vld [vmem:[%s1100_s2] sm:$0xff]  ;;  %s601_s13 = sshll.u32 %s598_s29, 4  ;;  %s602_s13 = int_to_ptr.hbm [resolvable:$true] %s601_s13 }
  0x1b   : > { %337 = vmatpush.msra.mxu1 %v330_v5  ;;  %370 = vmatpush.msra.mxu2 %v330_v5  ;;  %v259_v24 = vpack.c.bf16 %v257_v22, %v256_v21  ;;  %v448_v34 = vld [vmem:[%s1101_s3] sm:$0xff]  ;;  %s779_s11 = sshra.s32 %s602_s13, 4  ;;  %s780_s11 = int_to_ptr.hbm [resolvable:$true] %s779_s11 }
  0x1c   : > { %305 = vmatpush.bf16.msra.mxu0 %v708_v6  ;;  %477 = vmatpush.msra.mxu3 %v448_v34  ;;  %s781_s14 = scalar_lea.hbm %s780_s11, 64  ;;  %p786_p0 = scmp.lt.s32.totalorder %s780_s11, %s1104_s6 }
  0x1d   : > { %338 = vmatpush.msra.mxu1 %v329_v7  ;;  %371 = vmatpush.msra.mxu2 %v329_v7  ;;  %p782_p11 = scmp.ne.s32.totalorder %s780_s11, %s781_s14  ;;  %p787_p1 = scmp.lt.s32.totalorder %s785_s16, %s781_s14 }
  0x1e   : > { %522 = vmatpush.msrb.mxu3 %v448_v34 }
  0x1f   : > { %339 = vmatpush.msra.mxu1 %v328_v8  ;;  %372 = vmatpush.msra.mxu2 %v328_v8  ;;  %p783_p12 = pnand %p782_p11, %p905_p5  ;;  %p788_p2 = por %p787_p1, %p786_p0 }
  0x20   : > { %306 = vmatpush.bf16.msra.mxu0 %v707_v9 }
  0x21   : > { %340 = vmatpush.msra.mxu1 %v327_v12  ;;  %373 = vmatpush.msra.mxu2 %v327_v12  ;;  %p784_p13 = pneg %p783_p12 }
  0x23   : > { %341 = vmatpush.msra.mxu1 %v326_v14  ;;  %687 = vmatmul.msk.bf16.vlgmr.msra.gmra.mxu0 %vm292_vm0, %v258_v13  ;;  %p789_p3 = pnand %p788_p2, %p784_p13 }
  0x24   : > { %374 = vmatpush.msra.mxu2 %v326_v14 }
  0x25   : > { %342 = vmatpush.msra.mxu1 %v325_v15 }
  0x26   : > { %375 = vmatpush.msra.mxu2 %v325_v15 }
  0x27   : > { %343 = vmatpush.msra.mxu1 %v324_v16 }
  0x28   : > { %376 = vmatpush.msra.mxu2 %v324_v16 }
  0x29   : > { %344 = vmatpush.msra.mxu1 %v323_v17 }
  0x2a   : > { %377 = vmatpush.msra.mxu2 %v323_v17 }
  0x2b   : > { %345 = vmatpush.msra.mxu1 %v322_v18 }
  0x2c   : > { %378 = vmatpush.msra.mxu2 %v322_v18 }
  0x2d   : > { %346 = vmatpush.msra.mxu1 %v321_v19 }
  0x2e   : > { %379 = vmatpush.msra.mxu2 %v321_v19 }
  0x2f   : > { %347 = vmatpush.msra.mxu1 %v320_v20 }
  0x30   : > { %380 = vmatpush.msra.mxu2 %v320_v20 }
  0x31   : > { %348 = vmatpush.msra.mxu1 %v319_v23 }
  0x32   : > { %381 = vmatpush.msra.mxu2 %v319_v23 }
  0x33   : > { %688 = vmatmul.msk.bf16.gmra.mxu0 %vm292_vm0, %v259_v24  ;;  %349 = vmatpush.msra.mxu1 %v318_v25 }
  0x34   : > { %382 = vmatpush.msra.mxu2 %v318_v25 }
  0xa0   : > { %v987_v26 = vpop.f32.mrf.mxu0 }
  0xa1   : > { %350 = vmatmul.f32.vlgmr.msra.gmra.mxu1 %v987_v26  ;;  %v363_v27 = vmul.f32 %v987_v26, %v987_v26 }
  0xa3   : > { %383 = vmatmul.f32.vlgmr.msra.gmra.mxu2 %v363_v27 }
  0xa8   : > { %v992_v28 = vpop.f32.mrf.mxu0 }
  0xa9   : > { %353 = vmatmul.f32.gmra.mxu1 %v992_v28  ;;  %v364_v29 = vmul.f32 %v992_v28, %v992_v28 }
  0xab   : > { %386 = vmatmul.f32.gmra.mxu2 %v364_v29 }
  0xb0   : > { %v997_v30 = vpop.f32.mrf.mxu0 }
  0xb1   : > { %356 = vmatmul.f32.gmra.mxu1 %v997_v30  ;;  %v365_v31 = vmul.f32 %v997_v30, %v997_v30 }
  0xb3   : > { %389 = vmatmul.f32.gmra.mxu2 %v365_v31  ;;  %v755_v31 = vld [vmem:[%s1102_s4] ss:$0 sm:$0xff] }
  0xb8   : > { %v1002_v32 = vpop.f32.mrf.mxu0 }
  0xb9   : > { %359 = vmatmul.f32.gmra.mxu1 %v1002_v32  ;;  %v366_v33 = vmul.f32 %v1002_v32, %v1002_v32 }
  0xbb   : > { %392 = vmatmul.f32.gmra.mxu2 %v366_v33 }
 0x11e   : > { %v1010_v35 = vpop.f32.mrf.mxu1 }
 0x11f   : > { %v396_v36 = vmul.f32 %v1010_v35, %v1010_v35 }
 0x126   : > { %v1014_v37 = vpop.f32.mrf.mxu1  ;;  %v384_v38 = vpop.f32.mrf.mxu2 }
 0x127   : > { %v400_v39 = vsub.f32 %v384_v38, %v396_v36  ;;  %v397_v41 = vmul.f32 %v1014_v37, %v1014_v37 }
 0x129   : > { %v404_v40 = vadd.f32 1e-05, %v400_v39 }
 0x12b   : > { %757 = vrsqrt.f32 %v404_v40  ;;  %vm414_vm2 = vweird.f32 %v404_v40 }
 0x12e   : > { %v387_v42 = vpop.f32.mrf.mxu2  ;;  %v1018_v44 = vpop.f32.mrf.mxu1 }
 0x12f   : > { %v401_v43 = vsub.f32 %v387_v42, %v397_v41  ;;  %v398_v49 = vmul.f32 %v1018_v44, %v1018_v44 }
 0x131   : > { %v758_v45 = vpop.eup %757  ;;  %v405_v46 = vadd.f32 1e-05, %v401_v43 }
 0x132   : > { %v409_v47 = vmul.f32 %v758_v45, %v404_v40  ;;  %vm415_vm1 = vweird.f32 %v758_v45 }
 0x133   : > { %759 = vrsqrt.f32 %v405_v46  ;;  %vm416_vm4 = vmor %vm414_vm2, %vm415_vm1  ;;  %vm424_vm6 = vweird.f32 %v405_v46 }
 0x134   : > { %v410_v48 = vmul.f32 %v758_v45, %v409_v47 }
 0x136   : > { %v411_v50 = vmul.f32 0.5, %v410_v48  ;;  %v390_v51 = vpop.f32.mrf.mxu2  ;;  %v360_v57 = vpop.f32.mrf.mxu1 }
 0x137   : > { %v402_v52 = vsub.f32 %v390_v51, %v398_v49  ;;  %v399_v61 = vmul.f32 %v360_v57, %v360_v57 }
 0x138   : > { %v412_v53 = vsub.f32 1.5, %v411_v50 }
 0x139   : > { %v760_v54 = vpop.eup %759  ;;  %v406_v55 = vadd.f32 1e-05, %v402_v52 }
 0x13a   : > { %v419_v56 = vmul.f32 %v760_v54, %v405_v46  ;;  %v413_v58 = vmul.f32 %v758_v45, %v412_v53  ;;  %vm425_vm5 = vweird.f32 %v760_v54 }
 0x13b   : > { %761 = vrsqrt.f32 %v406_v55  ;;  %vm426_vm7 = vmor %vm424_vm6, %vm425_vm5  ;;  %vm434_vm9 = vweird.f32 %v406_v55 }
 0x13c   : > { %v420_v59 = vmul.f32 %v760_v54, %v419_v56  ;;  %v417_v60 = vsel %vm416_vm4, %v758_v45, %v413_v58 }
 0x13d   : > { %689 = vmatmul.msk.f32.vlgmr.msra.gmra.mxu3 %vm449_vm3, %v417_v60  ;;  %v491_v19 = vmul.f32 %v417_v60, %v1010_v35  ;;  %v756_v35 = vld [vmem:[%s1103_s5] ss:$0 sm:$0xff] }
 0x13e   : > { %v421_v62 = vmul.f32 0.5, %v420_v59  ;;  %v393_v63 = vpop.f32.mrf.mxu2 }
 0x13f   : > { %v403_v0 = vsub.f32 %v393_v63, %v399_v61 }
 0x140   : > { %v422_v1 = vsub.f32 1.5, %v421_v62 }
 0x141   : > { %v762_v2 = vpop.eup %761  ;;  %v407_v3 = vadd.f32 1e-05, %v403_v0 }
 0x142   : > { %v429_v4 = vmul.f32 %v762_v2, %v406_v55  ;;  %v423_v5 = vmul.f32 %v760_v54, %v422_v1  ;;  %vm435_vm8 = vweird.f32 %v762_v2 }
 0x143   : > { %763 = vrsqrt.f32 %v407_v3  ;;  %vm436_vm10 = vmor %vm434_vm9, %vm435_vm8  ;;  %vm444_vm12 = vweird.f32 %v407_v3 }
 0x144   : > { %v430_v6 = vmul.f32 %v762_v2, %v429_v4  ;;  %v427_v7 = vsel %vm426_vm7, %v760_v54, %v423_v5 }
 0x145   : > { %690 = vmatmul.msk.f32.gmra.mxu3 %vm449_vm3, %v427_v7  ;;  %v492_v20 = vmul.f32 %v427_v7, %v1014_v37 }
 0x146   : > { %v431_v8 = vmul.f32 0.5, %v430_v6 }
 0x148   : > { %v432_v9 = vsub.f32 1.5, %v431_v8 }
 0x149   : > { %v764_v10 = vpop.eup %763 }
 0x14a   : > { %v439_v11 = vmul.f32 %v764_v10, %v407_v3  ;;  %v433_v12 = vmul.f32 %v762_v2, %v432_v9  ;;  %vm445_vm11 = vweird.f32 %v764_v10 }
 0x14b   : > { %vm446_vm13 = vmor %vm444_vm12, %vm445_vm11 }
 0x14c   : > { %v440_v13 = vmul.f32 %v764_v10, %v439_v11  ;;  %v437_v14 = vsel %vm436_vm10, %v762_v2, %v433_v12 }
 0x14d   : > { %691 = vmatmul.msk.f32.gmra.mxu3 %vm449_vm3, %v437_v14  ;;  %v493_v21 = vmul.f32 %v437_v14, %v1018_v44 }
 0x14e   : > { %v441_v15 = vmul.f32 0.5, %v440_v13 }
 0x150   : > { %v442_v16 = vsub.f32 1.5, %v441_v15 }
 0x152   : > { %v443_v17 = vmul.f32 %v764_v10, %v442_v16 }
 0x154   : > { %v447_v18 = vsel %vm446_vm13, %v764_v10, %v443_v17 }
 0x155   : > { %692 = vmatmul.msk.f32.gmra.mxu3 %vm449_vm3, %v447_v18  ;;  %v494_v22 = vmul.f32 %v447_v18, %v360_v57 }
 0x15d   : > { %693 = vmatmul.msk.f32.vlgmr.msrb.gmra.mxu3 %vm449_vm3, %v491_v19 }
 0x165   : > { %694 = vmatmul.msk.f32.gmra.mxu3 %vm449_vm3, %v492_v20 }
 0x16d   : > { %695 = vmatmul.msk.f32.gmra.mxu3 %vm449_vm3, %v493_v21 }
 0x175   : > { %696 = vmatmul.msk.f32.gmra.mxu3 %vm449_vm3, %v494_v22 }
 0x1c0   : > { %v479_v23 = vpop.f32.mrf.mxu3 }
 0x1c1   : > { %v536_v29 = vmul.f32 %v479_v23, %v987_v26 }
 0x1c8   : > { %v482_v24 = vpop.f32.mrf.mxu3 }
 0x1c9   : > { %v537_v38 = vmul.f32 %v482_v24, %v992_v28 }
 0x1d0   : > { %v485_v25 = vpop.f32.mrf.mxu3 }
 0x1d1   : > { %v538_v42 = vmul.f32 %v485_v25, %v997_v30 }
 0x1d8   : > { %v488_v27 = vpop.f32.mrf.mxu3 }
 0x1d9   : > { %v539_v46 = vmul.f32 %v488_v27, %v1002_v32 }
 0x1e0   : > { %v524_v33 = vpop.f32.mrf.mxu3 }
 0x1e1   : > { %v540_v34 = vsub.f32 %v536_v29, %v524_v33 }
 0x1e3   : > { %v548_v36 = vmul.f32 %v755_v31, %v540_v34 }
 0x1e5   : > { %v556_v37 = vadd.f32 %v756_v35, %v548_v36 }
 0x1e7   : > { %568 = vrot.lane.b32.xlu0 %v556_v37, %s829_s18  ;;  %560 = vst.msk [vmem:[%s1044_s19] sm:$0xff] %vm292_vm0, %v556_v37 }
 0x1e8   : > { %v527_v26 = vpop.f32.mrf.mxu3 }
 0x1e9   : > { %v541_v39 = vsub.f32 %v537_v38, %v527_v26 }
 0x1eb   : > { %v549_v40 = vmul.f32 %v755_v31, %v541_v39 }
 0x1ed   : > { %v557_v41 = vadd.f32 %v756_v35, %v549_v40 }
 0x1ef   : > { %570 = vrot.lane.b32.xlu0 %v557_v41, %s829_s18  ;;  %561 = vst.msk [vmem:[%s1044_s19 + $0x10] sm:$0xff] %vm292_vm0, %v557_v41 }
 0x1f0   : > { %v530_v28 = vpop.f32.mrf.mxu3 }
 0x1f1   : > { %v542_v43 = vsub.f32 %v538_v42, %v530_v28 }
 0x1f3   : > { %v550_v44 = vmul.f32 %v755_v31, %v542_v43 }
 0x1f5   : > { %v558_v45 = vadd.f32 %v756_v35, %v550_v44 }
 0x1f7   : > { %572 = vrot.lane.b32.xlu1 %v558_v45, %s829_s18  ;;  %562 = vst.msk [vmem:[%s1044_s19 + $0x20] sm:$0xff] %vm292_vm0, %v558_v45 }
 0x1f8   : > { %v533_v47 = vpop.f32.mrf.mxu3 }
 0x1f9   : > { %v543_v48 = vsub.f32 %v539_v46, %v533_v47 }
 0x1fb   : > { %v551_v30 = vmul.f32 %v755_v31, %v543_v48 }
 0x1fd   : > { %v559_v49 = vadd.f32 %v756_v35, %v551_v30 }
 0x1ff   : > { %574 = vrot.lane.b32.xlu1 %v559_v49, %s829_s18  ;;  %563 = vst.msk [vmem:[%s1044_s19 + $0x30] sm:$0xff] %vm292_vm0, %v559_v49 }
 0x259   : > { %v569_v50 = vpop.permute.xlu0 %568 }
 0x25a   : > { %697 = vst.msk [vmem:[%s1044_s19 + $0x8] sm:$0xff] %vm292_vm0, %v569_v50 }
 0x261   : > { %v571_v51 = vpop.permute.xlu0 %570 }
 0x262   : > { %698 = vst.msk [vmem:[%s1044_s19 + $0x18] sm:$0xff] %vm292_vm0, %v571_v51 }
 0x269   : > { %v573_v32 = vpop.permute.xlu1 %572 }
 0x26a   : > { %699 = vst.msk [vmem:[%s1044_s19 + $0x28] sm:$0xff] %vm292_vm0, %v573_v32 }
 0x271   : > { %v575_v52 = vpop.permute.xlu1 %574 }
 0x272   : > { %700 = vst.msk [vmem:[%s1044_s19 + $0x38] sm:$0xff] %vm292_vm0, %v575_v52 }
 0x273   : > { %792 = shalt.err (!%p789_p3)
}
 0x274   : > { %s830_s12 = smov 128   ;;  %s831_s19 = smov 8  }
 0x275   : > { %713 = dma.vmem_to_hbm [thread:$0]  (%p905_p5), %s600_s9, 1024, %s602_s13, %s586_s10, %s830_s12, %s830_s12, %s831_s19  }
 0x276 PF: > { %p719_p4 = scmp.ge.s32.totalorder %s827_s24, 2  ;;  %s616_s20 = sand.u32 1, %s815_s21  }
 0x277   : > { %s617_s26 = scalar_lea.sflag [#allocation3], %s616_s20 }
 0x278   : > { %p716_p7 = pnand %p719_p4, %p909_p6 }
 0x27a   : > { %p717_p8 = pneg %p716_p7 }
 0x27c   : > { %810 = dma.done.wait (%p717_p8), %s617_s26, 1024  }
 0x27d   : > { %812 = vsyncadd (%p717_p8), %s617_s26, 4294966272  ;;  %p16_p9 = scmp.ge.s32.totalorder %s892_s27, 6   ;;  %s1107_s21 = smov %s819_s22 }
 0x27e   : > { %s1108_s22 = smov %s823_s23  ;;  %s1109_s23 = smov %s903_s30 }
 0x27f   : > { %s1110_s24 = smov %s892_s27  ;;  %18 = sbr.rel (!%p16_p9) target bundleno = 3 (0x3), region = 80 }
 0x284   :  { %623 = vsyncpa [#allocation3], 1 }
 0x285   :  { %625 = vsyncpa [#allocation3 + $0x1], 1 }

</bundles_post_ra>
